<compile_context>
chip_gen: v7x
topology: tpu7x:2x2x1
jax: 0.10.0
libtpu: 0.0.40
codegen_flags: <defaults>
</compile_context>

<pallas_src>
import jax
import jax.numpy as jnp
from jax import lax
from jax.experimental import pallas as pl
from jax.experimental.pallas import tpu as pltpu

EPS = 1e-5
LANE = 128  # lane-pad final logits so the output store is lane-dense


# ------------------------------ fused kernel ------------------------------- #

def resnet1d_kernel(x_ref, nf_ref, nl_ref, pool_ref,
                    w1_ref, b1_ref,
                    r1c1_w_ref, r1c1_b_ref, r1c2_w_ref, r1c2_b_ref,
                    r2c1_w_ref, r2c1_b_ref, r2c2_w_ref, r2c2_b_ref,
                    r2ds_w_ref, r2ds_b_ref,
                    fc_w_ref, fc_b_ref,
                    o_ref):
    """Forward for TB samples stacked along rows (N = TB*L).

    x_ref:    (N, 1)        stacked input rows (row = b*L + t)
    nf_ref:   (N, 1)        1.0 except rows where t == 0      (left 'same' pad)
    nl_ref:   (N, 1)        1.0 except rows where t == L - 1  (right 'same' pad)
    pool_ref: (TB, N)       per-sample mean matrix (entries 1/L)
    w1_ref:   (3, 32), b1_ref (1, 32)            layer1 taps (Cin = 1)
    r*c*_w:   (3*Cin, Cout), r*c*_b (1, Cout)    conv weights, tap-major (BN folded)
    r2ds_w:   (32, 64), r2ds_b (1, 64)           1x1 downsample (BN folded)
    fc_w:     (64, 128), fc_b (1, 128)           final linear, lane-padded
    o_ref:    (1, TB, 128)
    """
    nf = nf_ref[...]                       # (N, 1)
    nl = nl_ref[...]                       # (N, 1)

    def conv3(h, w_ref, b_ref, relu):
        # 3-tap 'same' conv: shifted operands via sublane roll + boundary mask,
        # one small MXU matmul per tap (no scratch, no masked stores).
        n, cin = h.shape
        h_prev = pltpu.roll(h, 1, axis=0) * nf           # h[t-1], zeroed at t == 0
        h_next = pltpu.roll(h, n - 1, axis=0) * nl       # h[t+1], zeroed at t == L-1
        y = (jnp.dot(h_prev, w_ref[0:cin, :],        preferred_element_type=jnp.float32)
             + jnp.dot(h,    w_ref[cin:2 * cin, :],  preferred_element_type=jnp.float32)
             + jnp.dot(h_next, w_ref[2 * cin:3 * cin, :],
                       preferred_element_type=jnp.float32)
             + b_ref[...])
        return jnp.maximum(y, 0.0) if relu else y

    # ---- layer1: Conv1d(1, 32, k=3, pad=1) -- Cin == 1, VPU broadcast MAC ----
    xc = x_ref[...]                                       # (N, 1)
    n = xc.shape[0]
    c0 = xc * w1_ref[0:1, :]                              # tap k=0 contributions
    c1 = xc * w1_ref[1:2, :]                              # tap k=1 (center)
    c2 = xc * w1_ref[2:3, :]                              # tap k=2
    h = (c1
         + pltpu.roll(c0, 1, axis=0) * nf                 # x[t-1]*w0, masked at t==0
         + pltpu.roll(c2, n - 1, axis=0) * nl             # x[t+1]*w2, masked at t==L-1
         + b1_ref[...])                                   # (N, 32)

    # ---- res1: ResBlock1D(32, 32), identity skip ----
    out = conv3(h, r1c1_w_ref, r1c1_b_ref, relu=True)
    out = conv3(out, r1c2_w_ref, r1c2_b_ref, relu=False)
    h = jnp.maximum(out + h, 0.0)                         # (N, 32)

    # ---- res2: ResBlock1D(32, 64), 1x1-conv+BN skip (BN folded) ----
    out = conv3(h, r2c1_w_ref, r2c1_b_ref, relu=True)
    out = conv3(out, r2c2_w_ref, r2c2_b_ref, relu=False)
    idn = jnp.dot(h, r2ds_w_ref[...],
                  preferred_element_type=jnp.float32) + r2ds_b_ref[...]
    h = jnp.maximum(out + idn, 0.0)                       # (N, 64)

    # ---- AdaptiveAvgPool1d(1) (per-sample mean as matmul) + Linear(64, classes) ----
    pooled = jnp.dot(pool_ref[...], h,
                     preferred_element_type=jnp.float32)              # (TB, 64)
    logits = jnp.dot(pooled, fc_w_ref[...],
                     preferred_element_type=jnp.float32) + fc_b_ref[...]
    o_ref[0] = logits                                     # (TB, 128) lane-dense store


# ------------------------------ Pallas wrapper ------------------------------ #

def _pick_tb(B, L, max_rows=512):
    """Samples per grid step.

    Keep >= 2 grid steps so v7x's two TensorCores both get work, keep the
    stacked row count modest (vreg/VMEM friendly; v7x only has 64 MiB VMEM),
    and keep the stacked block 8-sublane aligned.
    """
    best = 1
    for tb in range(1, B + 1):
        if B % tb:
            continue
        if (tb * L) % 8 != 0 and tb != B:
            continue
        if tb * L > max_rows:
            continue
        if B >= 2 and B // tb < 2:
            continue
        best = tb
    return best


def resnet1d_pallas(x_ncl, p, num_classes):
    """x_ncl: (B, 1, L) like PyTorch NCL input."""
    B, cin, L = x_ncl.shape
    assert cin == 1
    TB = _pick_tb(B, L)
    G = B // TB
    N = TB * L

    # Stacked row layout: row = b*L + t  (tiny input; layout plumbing only).
    x = x_ncl.astype(jnp.float32).reshape(B * L, 1)

    # Per-sample boundary masks (same for every grid step -> constant index_map).
    t = jnp.arange(N, dtype=jnp.int32) % L
    not_first = (t != 0).astype(jnp.float32).reshape(N, 1)
    not_last = (t != (L - 1)).astype(jnp.float32).reshape(N, 1)
    # Per-sample mean-pooling matrix (TB, N), entries 1/L.
    pool_mat = ((jnp.arange(TB, dtype=jnp.int32)[:, None]
                 == (jnp.arange(N, dtype=jnp.int32) // L)[None, :])
                .astype(jnp.float32) / L)

    weights = [p['layer1_w'], p['layer1_b'],
               p['r1c1_w'], p['r1c1_b'], p['r1c2_w'], p['r1c2_b'],
               p['r2c1_w'], p['r2c1_b'], p['r2c2_w'], p['r2c2_b'],
               p['r2ds_w'], p['r2ds_b'],
               p['fc_w'], p['fc_b']]
    # All weights are 2-D and shared by every grid step (constant block index).
    w_specs = [pl.BlockSpec(w.shape, lambda g: (0, 0)) for w in weights]

    # Advisory cost estimate for XLA's scheduler around the custom call.
    flops = B * (2 * L * (3 * 32 + 96 * 32 + 96 * 32 + 96 * 64 + 192 * 64 + 32 * 64)
                 + 2 * 64 * LANE + L * 64)
    bytes_accessed = 4 * int(x.size + sum(int(w.size) for w in weights)
                             + 2 * N + TB * N + B * LANE)

    out = pl.pallas_call(
        resnet1d_kernel,
        out_shape=jax.ShapeDtypeStruct((G, TB, LANE), jnp.float32),
        grid=(G,),
        in_specs=[pl.BlockSpec((N, 1), lambda g: (g, 0)),      # stacked input rows
                  pl.BlockSpec((N, 1), lambda g: (0, 0)),      # not_first mask
                  pl.BlockSpec((N, 1), lambda g: (0, 0)),      # not_last mask
                  pl.BlockSpec((TB, N), lambda g: (0, 0))      # pooling matrix
                  ] + w_specs,
        out_specs=pl.BlockSpec((1, TB, LANE), lambda g: (g, 0, 0)),
        compiler_params=pltpu.CompilerParams(
            dimension_semantics=("parallel",)),                 # batch across v7x's 2 TCs
        cost_estimate=pl.CostEstimate(flops=flops, transcendentals=0,
                                      bytes_accessed=bytes_accessed),
    )(x, not_first, not_last, pool_mat, *weights)

    return out.reshape(B, LANE)[:, :num_classes]


# --------------------------- parameter preparation ------------------------- #

def fold_bn(w_oik, b_o, gamma, beta, mean, var):
    """Fold eval-mode BatchNorm1d into the preceding Conv1d (exact)."""
    scale = gamma / jnp.sqrt(var + EPS)
    w_eff = w_oik * scale[:, None, None]
    b_eff = (b_o - mean) * scale + beta
    return w_eff, b_eff


def to_im2col(w_oik):
    """(Cout, Cin, K) -> (K*Cin, Cout): rows [k*Cin:(k+1)*Cin] are tap k."""
    Cout, Cin, K = w_oik.shape
    return jnp.transpose(w_oik, (2, 1, 0)).reshape(K * Cin, Cout)


def init_raw_params(key, num_classes):
    ks = jax.random.split(key, 34)
    n = lambda i, shape, s=0.1: s * jax.random.normal(ks[i], shape, jnp.float32)

    def bn_params(i, c):
        gamma = 1.0 + 0.1 * jax.random.normal(ks[i], (c,), jnp.float32)
        beta = 0.1 * jax.random.normal(ks[i + 1], (c,), jnp.float32)
        mean = 0.1 * jax.random.normal(ks[i + 2], (c,), jnp.float32)
        var = 0.5 + jnp.abs(jax.random.normal(ks[i + 3], (c,), jnp.float32))
        return (gamma, beta, mean, var)

    raw = {
        'layer1_w': n(0, (32, 1, 3)), 'layer1_b': n(1, (32,)),
        'r1c1_w': n(2, (32, 32, 3)), 'r1c1_b': n(3, (32,)), 'r1bn1': bn_params(4, 32),
        'r1c2_w': n(8, (32, 32, 3)), 'r1c2_b': n(9, (32,)), 'r1bn2': bn_params(10, 32),
        'r2c1_w': n(14, (64, 32, 3)), 'r2c1_b': n(15, (64,)), 'r2bn1': bn_params(16, 64),
        'r2c2_w': n(20, (64, 64, 3)), 'r2c2_b': n(21, (64,)), 'r2bn2': bn_params(22, 64),
        'r2ds_w': n(26, (64, 32, 1)), 'r2ds_b': n(27, (64,)), 'r2dsbn': bn_params(28, 64),
        'fc_w': n(32, (num_classes, 64)), 'fc_b': n(33, (num_classes,)),
    }
    return raw


def prepare_params(raw, num_classes):
    """Fold BN, convert convs to tap-major weight layout, lane-pad the FC."""
    p = {}
    # layer1 (no BN): (32, 1, 3) -> (3, 32) taps for the VPU path.
    p['layer1_w'] = jnp.transpose(raw['layer1_w'], (2, 1, 0)).reshape(3, 32)
    p['layer1_b'] = raw['layer1_b'][None, :]

    for blk, c1, c2, ds in [('r1', 'r1c1', 'r1c2', None),
                            ('r2', 'r2c1', 'r2c2', 'r2ds')]:
        w, b = fold_bn(raw[c1 + '_w'], raw[c1 + '_b'], *raw[blk + 'bn1'])
        p[c1 + '_w'], p[c1 + '_b'] = to_im2col(w), b[None, :]
        w, b = fold_bn(raw[c2 + '_w'], raw[c2 + '_b'], *raw[blk + 'bn2'])
        p[c2 + '_w'], p[c2 + '_b'] = to_im2col(w), b[None, :]
        if ds is not None:
            w, b = fold_bn(raw[ds + '_w'], raw[ds + '_b'], *raw[blk + 'dsbn'])
            p[ds + '_w'], p[ds + '_b'] = to_im2col(w), b[None, :]   # (32, 64), (1, 64)

    fc_w = jnp.zeros((64, LANE), jnp.float32).at[:, :num_classes].set(raw['fc_w'].T)
    fc_b = jnp.zeros((1, LANE), jnp.float32).at[:, :num_classes].set(raw['fc_b'])
    p['fc_w'], p['fc_b'] = fc_w, fc_b
    return p


# -------------------------- pure-JAX reference ------------------------------ #

def ref_forward(x_ncl, raw):
    def conv(x, w, b, pad):
        y = lax.conv_general_dilated(x, w, (1,), [(pad, pad)],
                                     dimension_numbers=('NCH', 'OIH', 'NCH'))
        return y + b[None, :, None]

    def bn(x, stats):
        gamma, beta, mean, var = stats
        s = gamma / jnp.sqrt(var + EPS)
        return (x - mean[None, :, None]) * s[None, :, None] + beta[None, :, None]

    relu = lambda v: jnp.maximum(v, 0.0)

    x = conv(x_ncl, raw['layer1_w'], raw['layer1_b'], 1)
    # res1
    idn = x
    out = relu(bn(conv(x, raw['r1c1_w'], raw['r1c1_b'], 1), raw['r1bn1']))
    out = bn(conv(out, raw['r1c2_w'], raw['r1c2_b'], 1), raw['r1bn2'])
    x = relu(out + idn)
    # res2
    idn = bn(conv(x, raw['r2ds_w'], raw['r2ds_b'], 0), raw['r2dsbn'])
    out = relu(bn(conv(x, raw['r2c1_w'], raw['r2c1_b'], 1), raw['r2bn1']))
    out = bn(conv(out, raw['r2c2_w'], raw['r2c2_b'], 1), raw['r2bn2'])
    x = relu(out + idn)
    pooled = jnp.mean(x, axis=2)
    return pooled @ raw['fc_w'].T + raw['fc_b']


# ----------------------------------- main ----------------------------------- #

if __name__ == "__main__":
    B, input_length, num_classes = 8, 16, 5   # -> TB=4 samples/step, 2 grid steps
    key = jax.random.PRNGKey(0)
    k_x, k_p = jax.random.split(key)

    x = jax.random.normal(k_x, (B, 1, input_length), jnp.float32)  # NCL, like PyTorch
    raw = init_raw_params(k_p, num_classes)
    params = prepare_params(raw, num_classes)

    fwd = jax.jit(resnet1d_pallas, static_argnames=("num_classes",))
    out = jax.block_until_ready(fwd(x, params, num_classes=num_classes))

    ref = ref_forward(x, raw)
    assert out.shape == (B, num_classes)
    assert jnp.allclose(out, ref, atol=1e-4, rtol=1e-4), "mismatch vs JAX reference"

    print("KERNEL_OK")
</pallas_src>

<mosaic_0001>
module attributes {stable_mosaic.version = 11 : i64} {
  func.func @resnet1d_kernel(%arg0: i32, %arg1: memref<64x1xf32, #tpu.memory_space<vmem>>, %arg2: memref<64x1xf32, #tpu.memory_space<vmem>>, %arg3: memref<64x1xf32, #tpu.memory_space<vmem>>, %arg4: memref<4x64xf32, #tpu.memory_space<vmem>>, %arg5: memref<3x32xf32, #tpu.memory_space<vmem>>, %arg6: memref<1x32xf32, #tpu.memory_space<vmem>>, %arg7: memref<96x32xf32, #tpu.memory_space<vmem>>, %arg8: memref<1x32xf32, #tpu.memory_space<vmem>>, %arg9: memref<96x32xf32, #tpu.memory_space<vmem>>, %arg10: memref<1x32xf32, #tpu.memory_space<vmem>>, %arg11: memref<96x64xf32, #tpu.memory_space<vmem>>, %arg12: memref<1x64xf32, #tpu.memory_space<vmem>>, %arg13: memref<192x64xf32, #tpu.memory_space<vmem>>, %arg14: memref<1x64xf32, #tpu.memory_space<vmem>>, %arg15: memref<32x64xf32, #tpu.memory_space<vmem>>, %arg16: memref<1x64xf32, #tpu.memory_space<vmem>>, %arg17: memref<64x128xf32, #tpu.memory_space<vmem>>, %arg18: memref<1x128xf32, #tpu.memory_space<vmem>>, %arg19: memref<1x4x128xf32, #tpu.memory_space<vmem>>) attributes {dimension_semantics = [#tpu.dimension_semantics<parallel>], iteration_bounds = array<i64: 2>, scalar_prefetch = 0 : i64, scratch_operands = 0 : i64, tpu.core_type = #tpu.core_type<tc>, window_params = [{transform_indices = @transform_0, window_bounds = array<i64: 64, 1>}, {pipeline_mode = #tpu.pipeline_mode<synchronous>, transform_indices = @transform_1, window_bounds = array<i64: 64, 1>}, {pipeline_mode = #tpu.pipeline_mode<synchronous>, transform_indices = @transform_2, window_bounds = array<i64: 64, 1>}, {pipeline_mode = #tpu.pipeline_mode<synchronous>, transform_indices = @transform_3, window_bounds = array<i64: 4, 64>}, {pipeline_mode = #tpu.pipeline_mode<synchronous>, transform_indices = @transform_4, window_bounds = array<i64: 3, 32>}, {pipeline_mode = #tpu.pipeline_mode<synchronous>, transform_indices = @transform_5, window_bounds = array<i64: 1, 32>}, {pipeline_mode = #tpu.pipeline_mode<synchronous>, transform_indices = @transform_6, window_bounds = array<i64: 96, 32>}, {pipeline_mode = #tpu.pipeline_mode<synchronous>, transform_indices = @transform_7, window_bounds = array<i64: 1, 32>}, {pipeline_mode = #tpu.pipeline_mode<synchronous>, transform_indices = @transform_8, window_bounds = array<i64: 96, 32>}, {pipeline_mode = #tpu.pipeline_mode<synchronous>, transform_indices = @transform_9, window_bounds = array<i64: 1, 32>}, {pipeline_mode = #tpu.pipeline_mode<synchronous>, transform_indices = @transform_10, window_bounds = array<i64: 96, 64>}, {pipeline_mode = #tpu.pipeline_mode<synchronous>, transform_indices = @transform_11, window_bounds = array<i64: 1, 64>}, {pipeline_mode = #tpu.pipeline_mode<synchronous>, transform_indices = @transform_12, window_bounds = array<i64: 192, 64>}, {pipeline_mode = #tpu.pipeline_mode<synchronous>, transform_indices = @transform_13, window_bounds = array<i64: 1, 64>}, {pipeline_mode = #tpu.pipeline_mode<synchronous>, transform_indices = @transform_14, window_bounds = array<i64: 32, 64>}, {pipeline_mode = #tpu.pipeline_mode<synchronous>, transform_indices = @transform_15, window_bounds = array<i64: 1, 64>}, {pipeline_mode = #tpu.pipeline_mode<synchronous>, transform_indices = @transform_16, window_bounds = array<i64: 64, 128>}, {pipeline_mode = #tpu.pipeline_mode<synchronous>, transform_indices = @transform_17, window_bounds = array<i64: 1, 128>}, {transform_indices = @transform_18, window_bounds = array<i64: 1, 4, 128>}]} {
    %c0 = arith.constant 0 : index
    %c0_0 = arith.constant 0 : index
    %0 = vector.load %arg2[%c0, %c0_0] : memref<64x1xf32, #tpu.memory_space<vmem>>, vector<64x1xf32>
    %c0_1 = arith.constant 0 : index
    %c0_2 = arith.constant 0 : index
    %1 = vector.load %arg3[%c0_1, %c0_2] : memref<64x1xf32, #tpu.memory_space<vmem>>, vector<64x1xf32>
    %c0_3 = arith.constant 0 : index
    %c0_4 = arith.constant 0 : index
    %2 = vector.load %arg1[%c0_3, %c0_4] : memref<64x1xf32, #tpu.memory_space<vmem>>, vector<64x1xf32>
    %c0_5 = arith.constant 0 : index
    %c0_6 = arith.constant 0 : index
    %3 = vector.load %arg5[%c0_5, %c0_6] : memref<3x32xf32, #tpu.memory_space<vmem>>, vector<1x32xf32>
    %4 = vector.broadcast %2 : vector<64x1xf32> to vector<64x32xf32>
    %5 = vector.broadcast %3 : vector<1x32xf32> to vector<64x32xf32>
    %6 = arith.mulf %4, %5 : vector<64x32xf32>
    %c1 = arith.constant 1 : index
    %c0_7 = arith.constant 0 : index
    %7 = vector.load %arg5[%c1, %c0_7] : memref<3x32xf32, #tpu.memory_space<vmem>>, vector<1x32xf32>
    %8 = vector.broadcast %2 : vector<64x1xf32> to vector<64x32xf32>
    %9 = vector.broadcast %7 : vector<1x32xf32> to vector<64x32xf32>
    %10 = arith.mulf %8, %9 : vector<64x32xf32>
    %c2 = arith.constant 2 : index
    %c0_8 = arith.constant 0 : index
    %11 = vector.load %arg5[%c2, %c0_8] : memref<3x32xf32, #tpu.memory_space<vmem>>, vector<1x32xf32>
    %12 = vector.broadcast %2 : vector<64x1xf32> to vector<64x32xf32>
    %13 = vector.broadcast %11 : vector<1x32xf32> to vector<64x32xf32>
    %14 = arith.mulf %12, %13 : vector<64x32xf32>
    %c1_i32 = arith.constant 1 : i32
    %15 = tpu.dynamic_rotate %6 by %c1_i32 dim 0 : vector<64x32xf32>, i32 -> vector<64x32xf32>
    %16 = vector.broadcast %0 : vector<64x1xf32> to vector<64x32xf32>
    %17 = arith.mulf %15, %16 : vector<64x32xf32>
    %18 = arith.addf %10, %17 : vector<64x32xf32>
    %c63_i32 = arith.constant 63 : i32
    %19 = tpu.dynamic_rotate %14 by %c63_i32 dim 0 : vector<64x32xf32>, i32 -> vector<64x32xf32>
    %20 = vector.broadcast %1 : vector<64x1xf32> to vector<64x32xf32>
    %21 = arith.mulf %19, %20 : vector<64x32xf32>
    %22 = arith.addf %18, %21 : vector<64x32xf32>
    %c0_9 = arith.constant 0 : index
    %c0_10 = arith.constant 0 : index
    %23 = vector.load %arg6[%c0_9, %c0_10] : memref<1x32xf32, #tpu.memory_space<vmem>>, vector<1x32xf32>
    %24 = vector.broadcast %23 : vector<1x32xf32> to vector<64x32xf32>
    %25 = arith.addf %22, %24 : vector<64x32xf32>
    %c1_i32_11 = arith.constant 1 : i32
    %26 = tpu.dynamic_rotate %25 by %c1_i32_11 dim 0 : vector<64x32xf32>, i32 -> vector<64x32xf32>
    %27 = vector.broadcast %0 : vector<64x1xf32> to vector<64x32xf32>
    %28 = arith.mulf %26, %27 : vector<64x32xf32>
    %c63_i32_12 = arith.constant 63 : i32
    %29 = tpu.dynamic_rotate %25 by %c63_i32_12 dim 0 : vector<64x32xf32>, i32 -> vector<64x32xf32>
    %30 = vector.broadcast %1 : vector<64x1xf32> to vector<64x32xf32>
    %31 = arith.mulf %29, %30 : vector<64x32xf32>
    %c0_13 = arith.constant 0 : index
    %c0_14 = arith.constant 0 : index
    %32 = vector.load %arg7[%c0_13, %c0_14] : memref<96x32xf32, #tpu.memory_space<vmem>>, vector<32x32xf32>
    %cst = arith.constant dense<0.000000e+00> : vector<64x32xf32>
    %33 = tpu.matmul %28, %32, %cst {dimension_numbers = #tpu.dot_dimension_numbers<[1], [0], [0], [1], [0, 0, 1, 1], [], []>} : vector<64x32xf32>, vector<32x32xf32>, vector<64x32xf32> -> vector<64x32xf32>
    %c32 = arith.constant 32 : index
    %c0_15 = arith.constant 0 : index
    %34 = vector.load %arg7[%c32, %c0_15] : memref<96x32xf32, #tpu.memory_space<vmem>>, vector<32x32xf32>
    %cst_16 = arith.constant dense<0.000000e+00> : vector<64x32xf32>
    %35 = tpu.matmul %25, %34, %cst_16 {dimension_numbers = #tpu.dot_dimension_numbers<[1], [0], [0], [1], [0, 0, 1, 1], [], []>} : vector<64x32xf32>, vector<32x32xf32>, vector<64x32xf32> -> vector<64x32xf32>
    %36 = arith.addf %33, %35 : vector<64x32xf32>
    %c64 = arith.constant 64 : index
    %c0_17 = arith.constant 0 : index
    %37 = vector.load %arg7[%c64, %c0_17] : memref<96x32xf32, #tpu.memory_space<vmem>>, vector<32x32xf32>
    %cst_18 = arith.constant dense<0.000000e+00> : vector<64x32xf32>
    %38 = tpu.matmul %31, %37, %cst_18 {dimension_numbers = #tpu.dot_dimension_numbers<[1], [0], [0], [1], [0, 0, 1, 1], [], []>} : vector<64x32xf32>, vector<32x32xf32>, vector<64x32xf32> -> vector<64x32xf32>
    %39 = arith.addf %36, %38 : vector<64x32xf32>
    %c0_19 = arith.constant 0 : index
    %c0_20 = arith.constant 0 : index
    %40 = vector.load %arg8[%c0_19, %c0_20] : memref<1x32xf32, #tpu.memory_space<vmem>>, vector<1x32xf32>
    %41 = vector.broadcast %40 : vector<1x32xf32> to vector<64x32xf32>
    %42 = arith.addf %39, %41 : vector<64x32xf32>
    %cst_21 = arith.constant 0.000000e+00 : f32
    %43 = vector.broadcast %cst_21 : f32 to vector<64x32xf32>
    %44 = arith.maximumf %42, %43 : vector<64x32xf32>
    %c1_i32_22 = arith.constant 1 : i32
    %45 = tpu.dynamic_rotate %44 by %c1_i32_22 dim 0 : vector<64x32xf32>, i32 -> vector<64x32xf32>
    %46 = vector.broadcast %0 : vector<64x1xf32> to vector<64x32xf32>
    %47 = arith.mulf %45, %46 : vector<64x32xf32>
    %c63_i32_23 = arith.constant 63 : i32
    %48 = tpu.dynamic_rotate %44 by %c63_i32_23 dim 0 : vector<64x32xf32>, i32 -> vector<64x32xf32>
    %49 = vector.broadcast %1 : vector<64x1xf32> to vector<64x32xf32>
    %50 = arith.mulf %48, %49 : vector<64x32xf32>
    %c0_24 = arith.constant 0 : index
    %c0_25 = arith.constant 0 : index
    %51 = vector.load %arg9[%c0_24, %c0_25] : memref<96x32xf32, #tpu.memory_space<vmem>>, vector<32x32xf32>
    %cst_26 = arith.constant dense<0.000000e+00> : vector<64x32xf32>
    %52 = tpu.matmul %47, %51, %cst_26 {dimension_numbers = #tpu.dot_dimension_numbers<[1], [0], [0], [1], [0, 0, 1, 1], [], []>} : vector<64x32xf32>, vector<32x32xf32>, vector<64x32xf32> -> vector<64x32xf32>
    %c32_27 = arith.constant 32 : index
    %c0_28 = arith.constant 0 : index
    %53 = vector.load %arg9[%c32_27, %c0_28] : memref<96x32xf32, #tpu.memory_space<vmem>>, vector<32x32xf32>
    %cst_29 = arith.constant dense<0.000000e+00> : vector<64x32xf32>
    %54 = tpu.matmul %44, %53, %cst_29 {dimension_numbers = #tpu.dot_dimension_numbers<[1], [0], [0], [1], [0, 0, 1, 1], [], []>} : vector<64x32xf32>, vector<32x32xf32>, vector<64x32xf32> -> vector<64x32xf32>
    %55 = arith.addf %52, %54 : vector<64x32xf32>
    %c64_30 = arith.constant 64 : index
    %c0_31 = arith.constant 0 : index
    %56 = vector.load %arg9[%c64_30, %c0_31] : memref<96x32xf32, #tpu.memory_space<vmem>>, vector<32x32xf32>
    %cst_32 = arith.constant dense<0.000000e+00> : vector<64x32xf32>
    %57 = tpu.matmul %50, %56, %cst_32 {dimension_numbers = #tpu.dot_dimension_numbers<[1], [0], [0], [1], [0, 0, 1, 1], [], []>} : vector<64x32xf32>, vector<32x32xf32>, vector<64x32xf32> -> vector<64x32xf32>
    %58 = arith.addf %55, %57 : vector<64x32xf32>
    %c0_33 = arith.constant 0 : index
    %c0_34 = arith.constant 0 : index
    %59 = vector.load %arg10[%c0_33, %c0_34] : memref<1x32xf32, #tpu.memory_space<vmem>>, vector<1x32xf32>
    %60 = vector.broadcast %59 : vector<1x32xf32> to vector<64x32xf32>
    %61 = arith.addf %58, %60 : vector<64x32xf32>
    %62 = arith.addf %61, %25 : vector<64x32xf32>
    %cst_35 = arith.constant 0.000000e+00 : f32
    %63 = vector.broadcast %cst_35 : f32 to vector<64x32xf32>
    %64 = arith.maximumf %62, %63 : vector<64x32xf32>
    %c1_i32_36 = arith.constant 1 : i32
    %65 = tpu.dynamic_rotate %64 by %c1_i32_36 dim 0 : vector<64x32xf32>, i32 -> vector<64x32xf32>
    %66 = vector.broadcast %0 : vector<64x1xf32> to vector<64x32xf32>
    %67 = arith.mulf %65, %66 : vector<64x32xf32>
    %c63_i32_37 = arith.constant 63 : i32
    %68 = tpu.dynamic_rotate %64 by %c63_i32_37 dim 0 : vector<64x32xf32>, i32 -> vector<64x32xf32>
    %69 = vector.broadcast %1 : vector<64x1xf32> to vector<64x32xf32>
    %70 = arith.mulf %68, %69 : vector<64x32xf32>
    %c0_38 = arith.constant 0 : index
    %c0_39 = arith.constant 0 : index
    %71 = vector.load %arg11[%c0_38, %c0_39] : memref<96x64xf32, #tpu.memory_space<vmem>>, vector<32x64xf32>
    %cst_40 = arith.constant dense<0.000000e+00> : vector<64x64xf32>
    %72 = tpu.matmul %67, %71, %cst_40 {dimension_numbers = #tpu.dot_dimension_numbers<[1], [0], [0], [1], [0, 0, 1, 1], [], []>} : vector<64x32xf32>, vector<32x64xf32>, vector<64x64xf32> -> vector<64x64xf32>
    %c32_41 = arith.constant 32 : index
    %c0_42 = arith.constant 0 : index
    %73 = vector.load %arg11[%c32_41, %c0_42] : memref<96x64xf32, #tpu.memory_space<vmem>>, vector<32x64xf32>
    %cst_43 = arith.constant dense<0.000000e+00> : vector<64x64xf32>
    %74 = tpu.matmul %64, %73, %cst_43 {dimension_numbers = #tpu.dot_dimension_numbers<[1], [0], [0], [1], [0, 0, 1, 1], [], []>} : vector<64x32xf32>, vector<32x64xf32>, vector<64x64xf32> -> vector<64x64xf32>
    %75 = arith.addf %72, %74 : vector<64x64xf32>
    %c64_44 = arith.constant 64 : index
    %c0_45 = arith.constant 0 : index
    %76 = vector.load %arg11[%c64_44, %c0_45] : memref<96x64xf32, #tpu.memory_space<vmem>>, vector<32x64xf32>
    %cst_46 = arith.constant dense<0.000000e+00> : vector<64x64xf32>
    %77 = tpu.matmul %70, %76, %cst_46 {dimension_numbers = #tpu.dot_dimension_numbers<[1], [0], [0], [1], [0, 0, 1, 1], [], []>} : vector<64x32xf32>, vector<32x64xf32>, vector<64x64xf32> -> vector<64x64xf32>
    %78 = arith.addf %75, %77 : vector<64x64xf32>
    %c0_47 = arith.constant 0 : index
    %c0_48 = arith.constant 0 : index
    %79 = vector.load %arg12[%c0_47, %c0_48] : memref<1x64xf32, #tpu.memory_space<vmem>>, vector<1x64xf32>
    %80 = vector.broadcast %79 : vector<1x64xf32> to vector<64x64xf32>
    %81 = arith.addf %78, %80 : vector<64x64xf32>
    %cst_49 = arith.constant 0.000000e+00 : f32
    %82 = vector.broadcast %cst_49 : f32 to vector<64x64xf32>
    %83 = arith.maximumf %81, %82 : vector<64x64xf32>
    %c1_i32_50 = arith.constant 1 : i32
    %84 = tpu.dynamic_rotate %83 by %c1_i32_50 dim 0 : vector<64x64xf32>, i32 -> vector<64x64xf32>
    %85 = vector.broadcast %0 : vector<64x1xf32> to vector<64x64xf32>
    %86 = arith.mulf %84, %85 : vector<64x64xf32>
    %c63_i32_51 = arith.constant 63 : i32
    %87 = tpu.dynamic_rotate %83 by %c63_i32_51 dim 0 : vector<64x64xf32>, i32 -> vector<64x64xf32>
    %88 = vector.broadcast %1 : vector<64x1xf32> to vector<64x64xf32>
    %89 = arith.mulf %87, %88 : vector<64x64xf32>
    %c0_52 = arith.constant 0 : index
    %c0_53 = arith.constant 0 : index
    %90 = vector.load %arg13[%c0_52, %c0_53] : memref<192x64xf32, #tpu.memory_space<vmem>>, vector<64x64xf32>
    %cst_54 = arith.constant dense<0.000000e+00> : vector<64x64xf32>
    %91 = tpu.matmul %86, %90, %cst_54 {dimension_numbers = #tpu.dot_dimension_numbers<[1], [0], [0], [1], [0, 0, 1, 1], [], []>} : vector<64x64xf32>, vector<64x64xf32>, vector<64x64xf32> -> vector<64x64xf32>
    %c64_55 = arith.constant 64 : index
    %c0_56 = arith.constant 0 : index
    %92 = vector.load %arg13[%c64_55, %c0_56] : memref<192x64xf32, #tpu.memory_space<vmem>>, vector<64x64xf32>
    %cst_57 = arith.constant dense<0.000000e+00> : vector<64x64xf32>
    %93 = tpu.matmul %83, %92, %cst_57 {dimension_numbers = #tpu.dot_dimension_numbers<[1], [0], [0], [1], [0, 0, 1, 1], [], []>} : vector<64x64xf32>, vector<64x64xf32>, vector<64x64xf32> -> vector<64x64xf32>
    %94 = arith.addf %91, %93 : vector<64x64xf32>
    %c128 = arith.constant 128 : index
    %c0_58 = arith.constant 0 : index
    %95 = vector.load %arg13[%c128, %c0_58] : memref<192x64xf32, #tpu.memory_space<vmem>>, vector<64x64xf32>
    %cst_59 = arith.constant dense<0.000000e+00> : vector<64x64xf32>
    %96 = tpu.matmul %89, %95, %cst_59 {dimension_numbers = #tpu.dot_dimension_numbers<[1], [0], [0], [1], [0, 0, 1, 1], [], []>} : vector<64x64xf32>, vector<64x64xf32>, vector<64x64xf32> -> vector<64x64xf32>
    %97 = arith.addf %94, %96 : vector<64x64xf32>
    %c0_60 = arith.constant 0 : index
    %c0_61 = arith.constant 0 : index
    %98 = vector.load %arg14[%c0_60, %c0_61] : memref<1x64xf32, #tpu.memory_space<vmem>>, vector<1x64xf32>
    %99 = vector.broadcast %98 : vector<1x64xf32> to vector<64x64xf32>
    %100 = arith.addf %97, %99 : vector<64x64xf32>
    %c0_62 = arith.constant 0 : index
    %c0_63 = arith.constant 0 : index
    %101 = vector.load %arg15[%c0_62, %c0_63] : memref<32x64xf32, #tpu.memory_space<vmem>>, vector<32x64xf32>
    %cst_64 = arith.constant dense<0.000000e+00> : vector<64x64xf32>
    %102 = tpu.matmul %64, %101, %cst_64 {dimension_numbers = #tpu.dot_dimension_numbers<[1], [0], [0], [1], [0, 0, 1, 1], [], []>} : vector<64x32xf32>, vector<32x64xf32>, vector<64x64xf32> -> vector<64x64xf32>
    %c0_65 = arith.constant 0 : index
    %c0_66 = arith.constant 0 : index
    %103 = vector.load %arg16[%c0_65, %c0_66] : memref<1x64xf32, #tpu.memory_space<vmem>>, vector<1x64xf32>
    %104 = vector.broadcast %103 : vector<1x64xf32> to vector<64x64xf32>
    %105 = arith.addf %102, %104 : vector<64x64xf32>
    %106 = arith.addf %100, %105 : vector<64x64xf32>
    %cst_67 = arith.constant 0.000000e+00 : f32
    %107 = vector.broadcast %cst_67 : f32 to vector<64x64xf32>
    %108 = arith.maximumf %106, %107 : vector<64x64xf32>
    %c0_68 = arith.constant 0 : index
    %c0_69 = arith.constant 0 : index
    %109 = vector.load %arg4[%c0_68, %c0_69] : memref<4x64xf32, #tpu.memory_space<vmem>>, vector<4x64xf32>
    %cst_70 = arith.constant dense<0.000000e+00> : vector<4x64xf32>
    %110 = tpu.matmul %109, %108, %cst_70 {dimension_numbers = #tpu.dot_dimension_numbers<[1], [0], [0], [1], [0, 0, 1, 1], [], []>} : vector<4x64xf32>, vector<64x64xf32>, vector<4x64xf32> -> vector<4x64xf32>
    %c0_71 = arith.constant 0 : index
    %c0_72 = arith.constant 0 : index
    %111 = vector.load %arg17[%c0_71, %c0_72] : memref<64x128xf32, #tpu.memory_space<vmem>>, vector<64x128xf32>
    %cst_73 = arith.constant dense<0.000000e+00> : vector<4x128xf32>
    %112 = tpu.matmul %110, %111, %cst_73 {dimension_numbers = #tpu.dot_dimension_numbers<[1], [0], [0], [1], [0, 0, 1, 1], [], []>} : vector<4x64xf32>, vector<64x128xf32>, vector<4x128xf32> -> vector<4x128xf32>
    %c0_74 = arith.constant 0 : index
    %c0_75 = arith.constant 0 : index
    %113 = vector.load %arg18[%c0_74, %c0_75] : memref<1x128xf32, #tpu.memory_space<vmem>>, vector<1x128xf32>
    %114 = vector.broadcast %113 : vector<1x128xf32> to vector<4x128xf32>
    %115 = arith.addf %112, %114 : vector<4x128xf32>
    %c0_76 = arith.constant 0 : index
    %c0_77 = arith.constant 0 : index
    %c0_78 = arith.constant 0 : index
    %116 = vector.load %arg19[%c0_76, %c0_77, %c0_78] : memref<1x4x128xf32, #tpu.memory_space<vmem>>, vector<1x4x128xf32>
    %117 = vector.shape_cast %116 : vector<1x4x128xf32> to vector<4x128xf32>
    %118 = vector.shape_cast %115 : vector<4x128xf32> to vector<1x4x128xf32>
    tpu.vector_store %arg19[%c0_76, %c0_77, %c0_78], %118 {strides = array<i32>} : memref<1x4x128xf32, #tpu.memory_space<vmem>>, vector<1x4x128xf32>,
    return
  }
  func.func @transform_0(%arg0: i32) -> (i32, i32) {
    %c0_i32 = arith.constant 0 : i32
    %c0_i32_0 = arith.constant 0 : i32
    return %arg0, %c0_i32 : i32, i32
  }
  func.func @transform_1(%arg0: i32) -> (i32, i32) {
    %c0_i32 = arith.constant 0 : i32
    %c0_i32_0 = arith.constant 0 : i32
    %c0_i32_1 = arith.constant 0 : i32
    return %c0_i32, %c0_i32_0 : i32, i32
  }
  func.func @transform_2(%arg0: i32) -> (i32, i32) {
    %c0_i32 = arith.constant 0 : i32
    %c0_i32_0 = arith.constant 0 : i32
    %c0_i32_1 = arith.constant 0 : i32
    return %c0_i32, %c0_i32_0 : i32, i32
  }
  func.func @transform_3(%arg0: i32) -> (i32, i32) {
    %c0_i32 = arith.constant 0 : i32
    %c0_i32_0 = arith.constant 0 : i32
    %c0_i32_1 = arith.constant 0 : i32
    return %c0_i32, %c0_i32_0 : i32, i32
  }
  func.func @transform_4(%arg0: i32) -> (i32, i32) {
    %c0_i32 = arith.constant 0 : i32
    %c0_i32_0 = arith.constant 0 : i32
    %c0_i32_1 = arith.constant 0 : i32
    return %c0_i32, %c0_i32_0 : i32, i32
  }
  func.func @transform_5(%arg0: i32) -> (i32, i32) {
    %c0_i32 = arith.constant 0 : i32
    %c0_i32_0 = arith.constant 0 : i32
    %c0_i32_1 = arith.constant 0 : i32
    return %c0_i32, %c0_i32_0 : i32, i32
  }
  func.func @transform_6(%arg0: i32) -> (i32, i32) {
    %c0_i32 = arith.constant 0 : i32
    %c0_i32_0 = arith.constant 0 : i32
    %c0_i32_1 = arith.constant 0 : i32
    return %c0_i32, %c0_i32_0 : i32, i32
  }
  func.func @transform_7(%arg0: i32) -> (i32, i32) {
    %c0_i32 = arith.constant 0 : i32
    %c0_i32_0 = arith.constant 0 : i32
    %c0_i32_1 = arith.constant 0 : i32
    return %c0_i32, %c0_i32_0 : i32, i32
  }
  func.func @transform_8(%arg0: i32) -> (i32, i32) {
    %c0_i32 = arith.constant 0 : i32
    %c0_i32_0 = arith.constant 0 : i32
    %c0_i32_1 = arith.constant 0 : i32
    return %c0_i32, %c0_i32_0 : i32, i32
  }
  func.func @transform_9(%arg0: i32) -> (i32, i32) {
    %c0_i32 = arith.constant 0 : i32
    %c0_i32_0 = arith.constant 0 : i32
    %c0_i32_1 = arith.constant 0 : i32
    return %c0_i32, %c0_i32_0 : i32, i32
  }
  func.func @transform_10(%arg0: i32) -> (i32, i32) {
    %c0_i32 = arith.constant 0 : i32
    %c0_i32_0 = arith.constant 0 : i32
    %c0_i32_1 = arith.constant 0 : i32
    return %c0_i32, %c0_i32_0 : i32, i32
  }
  func.func @transform_11(%arg0: i32) -> (i32, i32) {
    %c0_i32 = arith.constant 0 : i32
    %c0_i32_0 = arith.constant 0 : i32
    %c0_i32_1 = arith.constant 0 : i32
    return %c0_i32, %c0_i32_0 : i32, i32
  }
  func.func @transform_12(%arg0: i32) -> (i32, i32) {
    %c0_i32 = arith.constant 0 : i32
    %c0_i32_0 = arith.constant 0 : i32
    %c0_i32_1 = arith.constant 0 : i32
    return %c0_i32, %c0_i32_0 : i32, i32
  }
  func.func @transform_13(%arg0: i32) -> (i32, i32) {
    %c0_i32 = arith.constant 0 : i32
    %c0_i32_0 = arith.constant 0 : i32
    %c0_i32_1 = arith.constant 0 : i32
    return %c0_i32, %c0_i32_0 : i32, i32
  }
  func.func @transform_14(%arg0: i32) -> (i32, i32) {
    %c0_i32 = arith.constant 0 : i32
    %c0_i32_0 = arith.constant 0 : i32
    %c0_i32_1 = arith.constant 0 : i32
    return %c0_i32, %c0_i32_0 : i32, i32
  }
  func.func @transform_15(%arg0: i32) -> (i32, i32) {
    %c0_i32 = arith.constant 0 : i32
    %c0_i32_0 = arith.constant 0 : i32
    %c0_i32_1 = arith.constant 0 : i32
    return %c0_i32, %c0_i32_0 : i32, i32
  }
  func.func @transform_16(%arg0: i32) -> (i32, i32) {
    %c0_i32 = arith.constant 0 : i32
    %c0_i32_0 = arith.constant 0 : i32
    %c0_i32_1 = arith.constant 0 : i32
    return %c0_i32, %c0_i32_0 : i32, i32
  }
  func.func @transform_17(%arg0: i32) -> (i32, i32) {
    %c0_i32 = arith.constant 0 : i32
    %c0_i32_0 = arith.constant 0 : i32
    %c0_i32_1 = arith.constant 0 : i32
    return %c0_i32, %c0_i32_0 : i32, i32
  }
  func.func @transform_18(%arg0: i32) -> (i32, i32, i32) {
    %c0_i32 = arith.constant 0 : i32
    %c0_i32_0 = arith.constant 0 : i32
    %c0_i32_1 = arith.constant 0 : i32
    return %arg0, %c0_i32, %c0_i32_0 : i32, i32, i32
  }
}

</mosaic_0001>

<bundles_post_ra>
// kernel: resnet1d_pallas.1
= control target key start
LH: loop header
LB: loop body
LE: loop exit
PB: predicated region body
PF: predicated region fallthrough
CT: control target
= control target key end

     0   :  { %s5230_s0 = inlined_call_operand.vmem [shape: f32[128,1], index: 0, kind: input, shape index: {}]   ;;  %s5231_s1 = inlined_call_operand.vmem [shape: f32[64,1], index: 1, kind: input, shape index: {}]   ;;  %s5232_s2 = inlined_call_operand.vmem [shape: f32[64,1], index: 2, kind: input, shape index: {}]   ;;  %s5233_s3 = inlined_call_operand.vmem [shape: f32[4,64], index: 3, kind: input, shape index: {}]   ;;  %s5234_s4 = inlined_call_operand.vmem [shape: f32[3,32], index: 4, kind: input, shape index: {}]   ;;  %s5235_s5 = inlined_call_operand.vmem [shape: f32[1,32], index: 5, kind: input, shape index: {}]   ;;  %s5236_s6 = inlined_call_operand.vmem [shape: f32[96,32], index: 6, kind: input, shape index: {}]   ;;  %s5237_s7 = inlined_call_operand.vmem [shape: f32[1,32], index: 7, kind: input, shape index: {}]   ;;  %s5238_s8 = inlined_call_operand.vmem [shape: f32[96,32], index: 8, kind: input, shape index: {}]   ;;  %s5239_s9 = inlined_call_operand.vmem [shape: f32[1,32], index: 9, kind: input, shape index: {}]   ;;  %s5240_s10 = inlined_call_operand.vmem [shape: f32[96,64], index: 10, kind: input, shape index: {}]   ;;  %s5241_s11 = inlined_call_operand.vmem [shape: f32[1,64], index: 11, kind: input, shape index: {}]   ;;  %s5242_s12 = inlined_call_operand.vmem [shape: f32[192,64], index: 12, kind: input, shape index: {}]   ;;  %s5243_s13 = inlined_call_operand.vmem [shape: f32[1,64], index: 13, kind: input, shape index: {}]   ;;  %s5244_s14 = inlined_call_operand.vmem [shape: f32[32,64], index: 14, kind: input, shape index: {}]   ;;  %s5245_s15 = inlined_call_operand.vmem [shape: f32[1,64], index: 15, kind: input, shape index: {}]   ;;  %s5246_s16 = inlined_call_operand.vmem [shape: f32[64,128], index: 16, kind: input, shape index: {}]   ;;  %s5247_s17 = inlined_call_operand.vmem [shape: f32[1,128], index: 17, kind: input, shape index: {}]   ;;  %s5248_s18 = inlined_call_operand.hbm [shape: f32[2,4,128], index: 18, kind: output, shape index: {}]  }
   0x1   :  { %5258 = sst [smem:[#allocation11_spill]] %s5230_s0 }
   0x2   :  { %5259 = sst [smem:[#allocation12_spill]] %s5231_s1 }
   0x3   :  { %5260 = sst [smem:[#allocation13_spill]] %s5232_s2 }
   0x4   :  { %5261 = sst [smem:[#allocation14_spill]] %s5233_s3 }
   0x5   :  { %5262 = sst [smem:[#allocation15_spill]] %s5248_s18 }
   0x6   :  { %23 = vsyncpa [#allocation3], 0 }
   0x7   :  { %25 = vsyncpa [#allocation3 + $0x1], 0  ;;  %s4220_s27 = smov 0   ;;  %s4222_s28 = smov 0  }
   0x8   :  { %s4224_s29 = smov 0   ;;  %s4226_s30 = smov 0  }
   0x9 LB: > { %5263 = sst [smem:[#allocation5_spill]] %s4106_s27  ;;  %s4241_s0 = sadd.s32 4294967295, %s4118_s30   ;;  %s4118_s30 = sphi %s4226_s30, %s5279_s30   ;;  %s4114_s29 = sphi %s4224_s29, %s5281_s29   ;;  %s4110_s28 = sphi %s4222_s28, %s5283_s28   ;;  %s4106_s27 = sphi %s4220_s27, %s5282_s27  }
   0xa   : > { %5264 = sst [smem:[#allocation6_spill]] %s4114_s29  ;;  %s3136_s19 = sadd.s32 4294967294, %s4118_s30  }
   0xb   : > { %5265 = sst [smem:[#allocation7_spill]] %s4118_s30  ;;  %s4245_s1 = sadd.s32 1, %s4118_s30  }
   0xc   : > { %5266 = sst [smem:[#allocation8_spill]] %s4245_s1  ;;  %s421_s20 = sadd.s32 1, %s4114_s29 }
   0xd   : > { %s418_s21 = ssub.s32 %s4118_s30, %s4245_s1  ;;  %p431_p0 = scmp.ne.s32.totalorder %s4114_s29, %s4110_s28 }
   0xe   : > { %p419_p1 = scmp.eq.s32.totalorder %s418_s21, 0  ;;  %p432_p2 = scmp.eq.s32.totalorder %s4241_s0, 1 }
   0xf   : > { %p437_p3 = scmp.ne.s32.totalorder %s4110_s28, %s4106_s27  ;;  %p438_p4 = scmp.eq.s32.totalorder %s3136_s19, 1 }
  0x10   : > { %s4256_s22 = scalar_select %p419_p1, %s4114_s29, %s421_s20  }
  0x11   : > { %p4258_p5 = por %p432_p2, %p431_p0  ;;  %p4262_p6 = por %p438_p4, %p437_p3 }
  0x12   : > { %5267 = sst [smem:[#allocation9_spill]] %s4256_s22  ;;  %p3139_p7 = scmp.ge.s32.totalorder %s4118_s30, 1 }
  0x13   : > { %s5269_s23 = scalar_select %p4262_p6, 1, 0 }
  0x14   : > { %p516_p8 = scmp.lt.s32.totalorder %s4118_s30, 3 }
  0x15   : > { %5270 = sst [smem:[#allocation10_spill]] %s5269_s23 }
  0x16   : > { %p517_p9 = pnand %p3139_p7, %p516_p8 }
  0x17   : > { %s5271_s26 = sld [smem:[#allocation12_spill]] (!%p517_p9)  ;;  %s3141_s19 = sshll.u32 (!%p517_p9), %s4241_s0, 3  ;;  %v4120_v1 = vmov (!%p517_p9), 0   ;;  %v894_v12 = vld [vmem:[%s5236_s6 + $0x20] sm:$0xff] (!%p517_p9)  ;;  %v895_v13 = vld [vmem:[%s5236_s6 + $0x28] sm:$0xff] (!%p517_p9)  ;;  %v896_v17 = vld [vmem:[%s5236_s6 + $0x30] sm:$0xff] (!%p517_p9)  ;;  %v687_v41 = vlaneseq (!%p517_p9) }
  0x18   : > { %520 = sbr.rel (%p517_p9) target bundleno = 1679 (0x68f), region = 92  ;;  %4054 = vset.pattern.permute.xlu1 (!%p517_p9), %v4120_v1  ;;  %4055 = vset.pattern.permute.xlu0 (!%p517_p9), %v4120_v1  ;;  %p571_p10 = scmp.lt.s32.totalorder (!%p517_p9), %s3141_s19, 15  ;;  %v3771_v14 = vpack.c.bf16 (!%p517_p9), %v895_v13, %v894_v12  ;;  %v897_v18 = vld [vmem:[%s5236_s6 + $0x38] sm:$0xff] (!%p517_p9)  ;;  %v890_v31 = vld [vmem:[%s5236_s6] sm:$0xff] (!%p517_p9)  ;;  %v891_v32 = vld [vmem:[%s5236_s6 + $0x8] sm:$0xff] (!%p517_p9)  ;;  %vm898_vm2 = vcmask (!%p517_p9), 261120  }
  0x19   : > { %s5272_s29 = sld [smem:[#allocation11_spill]] (!%p517_p9)  ;;  %s5273_s23 = sld [smem:[#allocation13_spill]] (!%p517_p9)  ;;  %v3775_v19 = vpack.c.bf16 (!%p517_p9), %v897_v18, %v896_v17  ;;  %v4338_v33 = vpack.c.bf16 (!%p517_p9), %v891_v32, %v890_v31  ;;  %v1373_v34 = vld [vmem:[%s5238_s8 + $0x20] sm:$0xff] (!%p517_p9)  ;;  %v1374_v35 = vld [vmem:[%s5238_s8 + $0x28] sm:$0xff] (!%p517_p9)  ;;  %v4365_v47 = vshrl.u32 (!%p517_p9), %v687_v41, 7  ;;  %vm2349_vm3 = vcmask (!%p517_p9), 523264  }
  0x1a   : > { %3772 = vmatprep.subr.bf16.mxu0 (!%p517_p9), %v3771_v14  ;;  %v3795_v36 = vpack.c.bf16 (!%p517_p9), %v1374_v35, %v1373_v34  ;;  %v4352_v40 = vld [vmem:[%s5234_s4] ss:$0 sm:$0xff] (!%p517_p9)  ;;  %v4357_v42 = vld [vmem:[%s5234_s4 + $0x2] ss:$0 sm:$0xff] (!%p517_p9)  ;;  %v4386_v57 = vld [vmem:[%s5234_s4 + $0x1] ss:$0 sm:$0xff] (!%p517_p9) }
  0x1b   : > { %3774 = vmatpush3.bf16.msra.mxu0 (!%p517_p9), %v3771_v14  ;;  %vm689_vm0 = vcmp.lt.s32.totalorder (!%p517_p9), %v4365_v47, 1  ;;  %vm762_vm1 = vcmp.lt.s32.totalorder (!%p517_p9), %v4365_v47, 7  ;;  %v1157_v32 = vld [vmem:[%s5236_s6 + $0x40] sm:$0xff] (!%p517_p9)  ;;  %v1158_v34 = vld [vmem:[%s5236_s6 + $0x48] sm:$0xff] (!%p517_p9)  ;;  %vm4122_vm4 = vmmov (!%p517_p9), 0   ;;  %s5274_s3 = sld [smem:[#allocation14_spill]] (!%p517_p9) }
  0x1c   : > { %3776 = vmatprep.subr.bf16.mxu0 (!%p517_p9), %v3775_v19  ;;  %3796 = vmatprep.subr.bf16.mxu1 (!%p517_p9), %v3795_v36  ;;  %s3260_s25 = sshll.u32 (!%p517_p9), %s4241_s0, 6  ;;  %s5275_s18 = sld [smem:[#allocation15_spill]] (!%p517_p9) }
  0x1d   : > { %v576_v0 = vld [vmem:[%s5271_s26] sm:$0xff] (!%p517_p9)  ;;  %v577_v9 = vld [vmem:[%s5271_s26 + $0x8] sm:$0xff] (!%p517_p9)  ;;  %v578_v10 = vld [vmem:[%s5271_s26 + $0x10] sm:$0xff] (!%p517_p9)  ;;  %3798 = vmatpush3.bf16.msra.mxu1 (!%p517_p9), %v3795_v36  ;;  %s4124_s0 = smov (!%p517_p9), [#allocation2]  }
  0x1e   : > { %700 = vperm.xlu1 (!%p517_p9), %4054, %v576_v0   ;;  %v579_v21 = vld [vmem:[%s5271_s26 + $0x18] sm:$0xff] (!%p517_p9)  ;;  %v581_v22 = vld [vmem:[%s5271_s26 + $0x28] sm:$0xff] (!%p517_p9)  ;;  %v580_v25 = vld [vmem:[%s5271_s26 + $0x20] sm:$0xff] (!%p517_p9) }
  0x1f   : > { %s5285_s19 = smov (!%p571_p10, %s3141_s19), 15  ;;  %v585_v8 = vld [vmem:[%s5273_s23 + $0x8] sm:$0xff]  ;;  %v584_v11 = vld [vmem:[%s5273_s23] sm:$0xff]  ;;  %v587_v20 = vld [vmem:[%s5273_s23 + $0x18] sm:$0xff]  ;;  %3778 = vmatpush3.bf16.msra.mxu0 %v3775_v19 }
  0x20   : > { %s3142_s20 = sshll.u32 %s5285_s19, 3  ;;  %v586_v23 = vld [vmem:[%s5273_s23 + $0x10] sm:$0xff]  ;;  %v583_v24 = vld [vmem:[%s5271_s26 + $0x38] sm:$0xff]  ;;  %v588_v27 = vld [vmem:[%s5273_s23 + $0x20] sm:$0xff]  ;;  %3780 = vmatprep.subr.bf16.mxu0 %v4338_v33 }
  0x21   : > { %s574_s1 = scalar_lea.vmem %s5272_s29, %s3142_s20  ;;  %v582_v26 = vld [vmem:[%s5271_s26 + $0x30] sm:$0xff]  ;;  %v589_v29 = vld [vmem:[%s5273_s23 + $0x28] sm:$0xff]  ;;  %v591_v30 = vld [vmem:[%s5273_s23 + $0x38] sm:$0xff]  ;;  %s567_s20 = sand.u32 1, %s4110_s28  }
  0x22   : > { %v593_v2 = vld [vmem:[%s574_s1 + $0x8] sm:$0xff]  ;;  %v592_v3 = vld [vmem:[%s574_s1] sm:$0xff]  ;;  %v594_v4 = vld [vmem:[%s574_s1 + $0x10] sm:$0xff]  ;;  %s3140_s21 = sshll.u32 %s567_s20, 2  ;;  %s5188_s30 = scalar_lea.hbm %s5275_s18, %s3260_s25 }
  0x23   : > { %608 = vperm.xlu1 %4054, %v593_v2   ;;  %603 = vperm.xlu0 %4055, %v592_v3   ;;  %v599_v5 = vld [vmem:[%s574_s1 + $0x38] sm:$0xff]  ;;  %v596_v6 = vld [vmem:[%s574_s1 + $0x20] sm:$0xff]  ;;  %v598_v15 = vld [vmem:[%s574_s1 + $0x30] sm:$0xff]  ;;  %s569_s27 = scalar_lea.vmem [#allocation2], %s3140_s21  ;;  %s4060_s21 = sshll.u32 %s4124_s0, 4  ;;  %s4061_s21 = int_to_ptr.vmem [resolvable:$false] %s4060_s21 }
  0x24   : > { %v595_v7 = vld [vmem:[%s574_s1 + $0x18] sm:$0xff]  ;;  %v597_v16 = vld [vmem:[%s574_s1 + $0x28] sm:$0xff]  ;;  %v590_v28 = vld [vmem:[%s5273_s23 + $0x30] sm:$0xff]  ;;  %s3077_s19 = sshll.u32 %s569_s27, 4  ;;  %s4062_s24 = scalar_lea.vmem %s4061_s21, 128  ;;  %s5190_s19 = int_to_ptr.vmem [resolvable:$true] %s3077_s19 }
  0x25   : > { %v892_v19 = vld [vmem:[%s5236_s6 + $0x10] sm:$0xff]  ;;  %s4056_s1 = scalar_lea.vmem %s5190_s19, 64  ;;  %p4063_p0 = scmp.lt.s32.totalorder %s5190_s19, %s4061_s21 }
  0x26   : > { %p4057_p11 = scmp.ne.s32.totalorder %s5190_s19, %s4056_s1  ;;  %p4064_p1 = scmp.lt.s32.totalorder %s4062_s24, %s4056_s1 }
  0x27   : > { %613 = vperm.xlu1 %4054, %v594_v4   ;;  %638 = vperm.xlu0 %4055, %v599_v5  }
  0x28   : > { %p4058_p12 = pnand %p4057_p11, %p4258_p5  ;;  %p4065_p2 = por %p4064_p1, %p4063_p0 }
  0x2a   : > { %p4059_p13 = pneg %p4058_p12 }
  0x2b   : > { %623 = vperm.xlu1 %4054, %v596_v6   ;;  %618 = vperm.xlu0 %4055, %v595_v7  }
  0x2c   : > { %p4066_p3 = pnand %p4065_p2, %p4059_p13 }
  0x2f   : > { %778 = vperm.xlu1 %4054, %v585_v8   ;;  %705 = vperm.xlu0 %4055, %v577_v9  }
  0x33   : > { %710 = vperm.xlu1 %4054, %v578_v10   ;;  %773 = vperm.xlu0 %4055, %v584_v11  }
  0x37   : > { %633 = vperm.xlu1 %4054, %v598_v15   ;;  %628 = vperm.xlu0 %4055, %v597_v16  }
  0x3b   : > { %788 = vperm.xlu1 %4054, %v587_v20   ;;  %715 = vperm.xlu0 %4055, %v579_v21   ;;  %v893_v20 = vld [vmem:[%s5236_s6 + $0x18] sm:$0xff] }
  0x3f   : > { %725 = vperm.xlu1 %4054, %v581_v22   ;;  %783 = vperm.xlu0 %4055, %v586_v23  }
  0x43   : > { %735 = vperm.xlu1 %4054, %v583_v24   ;;  %720 = vperm.xlu0 %4055, %v580_v25   ;;  %v4438_v24 = vld [vmem:[%s5235_s5] ss:$0 sm:$0xff] }
  0x47   : > { %730 = vperm.xlu1 %4054, %v582_v26   ;;  %793 = vperm.xlu0 %4055, %v588_v27   ;;  %v3783_v27 = vpack.c.bf16 %v893_v20, %v892_v19 }
  0x4b   : > { %803 = vperm.xlu1 %4054, %v590_v28   ;;  %798 = vperm.xlu0 %4055, %v589_v29  }
  0x4f   : > { %808 = vperm.xlu0 %4055, %v591_v30  }
  0x9d   : > { %v4347_v37 = vpop.permute.xlu1 %700 }
  0xa2   : > { %v609_v38 = vpop.permute.xlu1 %608  ;;  %v604_v39 = vpop.permute.xlu0 %603 }
  0xa3   : > { %v646_v43 = vmul.f32 %v4352_v40, %v609_v38  ;;  %v645_v44 = vmul.f32 %v4352_v40, %v604_v39  ;;  %v672_v49 = vmul.f32 %v4357_v42, %v609_v38  ;;  %v4373_v50 = vmul.f32 %v4357_v42, %v604_v39 }
  0xa4   : > { %v659_v1 = vmul.f32 %v4386_v57, %v609_v38  ;;  %v658_v4 = vmul.f32 %v4386_v57, %v604_v39 }
  0xa5   : > { %v680_v51 = vrot.slane %v646_v43, 7  ;;  %v679_v52 = vrot.slane %v645_v44, 7  ;;  %v755_v59 = vrot.slane %v672_v49, 1  ;;  %v754_v61 = vrot.slane %v4373_v50, 1 }
  0xa6   : > { %v4361_v45 = vpop.permute.xlu1 %613  ;;  %v4363_v46 = vpop.permute.xlu0 %638 }
  0xa7   : > { %v4369_v48 = vmul.f32 %v4352_v40, %v4363_v46  ;;  %v4377_v53 = vmul.f32 %v4357_v42, %v4361_v45  ;;  %v696_v60 = vsel %vm689_vm0, %v679_v52, %v680_v51  ;;  %v769_v6 = vsel %vm762_vm1, %v754_v61, %v755_v59 }
  0xa8   : > { %v647_v7 = vmul.f32 %v4352_v40, %v4361_v45  ;;  %v660_v43 = vmul.f32 %v4386_v57, %v4361_v45 }
  0xa9   : > { %v686_v54 = vrot.slane %v4369_v48, 7  ;;  %v756_v62 = vrot.slane %v4377_v53, 1 }
  0xaa   : > { %v4380_v55 = vpop.permute.xlu1 %623  ;;  %v619_v56 = vpop.permute.xlu0 %618  ;;  %v681_v21 = vrot.slane %v647_v7, 7 }
  0xab   : > { %v697_v58 = vsel %vm689_vm0, %v686_v54, %v679_v52  ;;  %v768_v8 = vsel %vm762_vm1, %v755_v59, %v756_v62  ;;  %v648_v11 = vmul.f32 %v4352_v40, %v619_v56  ;;  %v4422_v15 = vmul.f32 %v4357_v42, %v4380_v55 }
  0xac   : > { %v738_v2 = vmul.f32 %v4347_v37, %v697_v58  ;;  %v674_v16 = vmul.f32 %v4357_v42, %v619_v56  ;;  %v649_v28 = vmul.f32 %v4352_v40, %v4380_v55  ;;  %v695_v35 = vsel %vm689_vm0, %v680_v51, %v681_v21 }
  0xad   : > { %v682_v25 = vrot.slane %v648_v11, 7  ;;  %v758_v29 = vrot.slane %v4422_v15, 1  ;;  %v661_v44 = vmul.f32 %v4386_v57, %v619_v56  ;;  %v4473_v51 = vpack.c.bf16 %v1158_v34, %v1157_v32 }
  0xae   : > { %v4396_v63 = vpop.permute.xlu1 %778  ;;  %v4398_v0 = vpop.permute.xlu0 %705  ;;  %v746_v14 = vadd.f32 %v738_v2, %v658_v4  ;;  %v757_v30 = vrot.slane %v674_v16, 1  ;;  %v683_v52 = vrot.slane %v649_v28, 7  ;;  %v678_v16 = vmul.f32 %v4357_v42, %v4363_v46 }
  0xaf   : > { %v739_v3 = vmul.f32 %v4398_v0, %v696_v60  ;;  %v812_v12 = vmul.f32 %v4396_v63, %v768_v8  ;;  %v694_v39 = vsel %vm689_vm0, %v681_v21, %v682_v25 }
  0xb0   : > { %v766_v53 = vsel %vm762_vm1, %v757_v30, %v758_v29  ;;  %v767_v58 = vsel %vm762_vm1, %v756_v62, %v757_v30  ;;  %v761_v34 = vrot.slane %v678_v16, 1 }
  0xb1   : > { %v747_v5 = vadd.f32 %v739_v3, %v659_v1 }
  0xb2   : > { %v4413_v9 = vpop.permute.xlu1 %710  ;;  %v4415_v10 = vpop.permute.xlu0 %773 }
  0xb3   : > { %v811_v13 = vmul.f32 %v4415_v10, %v769_v6  ;;  %v820_v18 = vadd.f32 %v812_v12, %v747_v5  ;;  %v740_v41 = vmul.f32 %v4413_v9, %v695_v35 }
  0xb5   : > { %v819_v17 = vadd.f32 %v811_v13, %v746_v14  ;;  %v4447_v31 = vadd.f32 %v4438_v24, %v820_v18  ;;  %v748_v3 = vadd.f32 %v740_v41, %v660_v43  ;;  %v662_v18 = vmul.f32 %v4386_v57, %v4380_v55 }
  0xb6   : > { %v4431_v22 = vpop.permute.xlu1 %633  ;;  %v4433_v23 = vpop.permute.xlu0 %628 }
  0xb7   : > { %v4441_v26 = vadd.f32 %v4438_v24, %v819_v17  ;;  %v650_v59 = vmul.f32 %v4352_v40, %v4433_v23  ;;  %v651_v45 = vmul.f32 %v4352_v40, %v4431_v22  ;;  %v676_v56 = vmul.f32 %v4357_v42, %v4433_v23 }
  0xb8   : > { %v693_v40 = vsel %vm689_vm0, %v682_v25, %v683_v52  ;;  %v677_v7 = vmul.f32 %v4357_v42, %v4431_v22  ;;  %v663_v35 = vmul.f32 %v4386_v57, %v4433_v23 }
  0xb9   : > { %3457 = vmatprep.mubr.msk.f32.mxu0 %vm898_vm2, %v4441_v26  ;;  %v684_v5 = vrot.slane %v650_v59, 7  ;;  %v685_v8 = vrot.slane %v651_v45, 7  ;;  %v759_v11 = vrot.slane %v676_v56, 1  ;;  %v665_v59 = vmul.f32 %v4386_v57, %v4363_v46 }
  0xba   : > { %v4459_v36 = vpop.permute.xlu1 %788  ;;  %v4461_v38 = vpop.permute.xlu0 %715  ;;  %3458 = vmatmul.mubr.msk.f32.vlgmr.msra.gmra.mrb[0].mxu0 %vm898_vm2, %v4447_v31  ;;  %v760_v20 = vrot.slane %v677_v7, 1  ;;  %v842_v50 = vrot.slane %v4441_v26, 7 }
  0xbb   : > { %v741_v49 = vmul.f32 %v4461_v38, %v694_v39  ;;  %3782 = vmatpush3.bf16.msra.mxu0 %v4338_v33  ;;  %v814_v33 = vmul.f32 %v4459_v36, %v766_v53  ;;  %v692_v19 = vsel %vm689_vm0, %v683_v52, %v684_v5  ;;  %v691_v21 = vsel %vm689_vm0, %v684_v5, %v685_v8 }
  0xbc   : > { %3784 = vmatprep.subr.bf16.mxu0 %v3783_v27  ;;  %v765_v25 = vsel %vm762_vm1, %v758_v29, %v759_v11  ;;  %v664_v29 = vmul.f32 %v4386_v57, %v4431_v22  ;;  %v690_v39 = vsel %vm689_vm0, %v685_v8, %v686_v54  ;;  %v764_v43 = vsel %vm762_vm1, %v759_v11, %v760_v20  ;;  %v1159_v8 = vld [vmem:[%s5236_s6 + $0x50] sm:$0xff] }
  0xbd   : > { %v749_v60 = vadd.f32 %v741_v49, %v661_v44  ;;  %v763_v23 = vsel %vm762_vm1, %v760_v20, %v761_v34 }
  0xbe   : > { %v4486_v1 = vpop.permute.xlu1 %725  ;;  %v4488_v2 = vpop.permute.xlu0 %783 }
  0xbf   : > { %v813_v62 = vmul.f32 %v4488_v2, %v767_v58  ;;  %v822_v4 = vadd.f32 %v814_v33, %v749_v60  ;;  %3786 = vmatpush3.bf16.msra.mxu0 %v3783_v27  ;;  %v743_v42 = vmul.f32 %v4486_v1, %v692_v19  ;;  %v770_v33 = vsel %vm762_vm1, %v761_v34, %v754_v61 }
  0xc0   : > { %3788 = vmatprep.subr.bf16.mxu0 %v4473_v51 }
  0xc1   : > { %v821_v6 = vadd.f32 %v813_v62, %v748_v3  ;;  %v4507_v17 = vadd.f32 %v4438_v24, %v822_v4  ;;  %v751_v44 = vadd.f32 %v743_v42, %v663_v35 }
  0xc2   : > { %v4496_v12 = vpop.permute.xlu1 %735  ;;  %v4498_v13 = vpop.permute.xlu0 %720 }
  0xc3   : > { %v742_v14 = vmul.f32 %v4498_v13, %v693_v40  ;;  %v4502_v15 = vadd.f32 %v4438_v24, %v821_v6  ;;  %v745_v49 = vmul.f32 %v4496_v12, %v690_v39  ;;  %v843_v6 = vrot.slane %v4447_v31, 7 }
  0xc4   : > { %v845_v19 = vrot.slane %v4507_v17, 7  ;;  %v866_v39 = vrot.slane %v4441_v26, 1 }
  0xc5   : > { %3460 = vmatprep.mubr.msk.f32.mxu0 %vm898_vm2, %v4502_v15  ;;  %v750_v28 = vadd.f32 %v742_v14, %v662_v18  ;;  %v753_v3 = vadd.f32 %v745_v49, %v665_v59  ;;  %v844_v5 = vrot.slane %v4502_v15, 7  ;;  %v856_v7 = vsel %vm689_vm0, %v842_v50, %v843_v6 }
  0xc6   : > { %v4520_v27 = vpop.permute.xlu1 %730  ;;  %3461 = vmatmul.mubr.msk.f32.gmra.mrb[2].mxu0 %vm898_vm2, %v4507_v17  ;;  %v4524_v55 = vpop.permute.xlu0 %793  ;;  %v859_v20 = vmul.f32 %v856_v7, %v4398_v0 }
  0xc7   : > { %v744_v30 = vmul.f32 %v4520_v27, %v691_v21  ;;  %v815_v32 = vmul.f32 %v4524_v55, %v765_v25  ;;  %v855_v14 = vsel %vm689_vm0, %v843_v6, %v844_v5  ;;  %v854_v42 = vsel %vm689_vm0, %v844_v5, %v845_v19 }
  0xc8   : > { %v860_v25 = vmul.f32 %v855_v14, %v4413_v9  ;;  %v861_v34 = vmul.f32 %v854_v42, %v4461_v38  ;;  %v1369_v42 = vld [vmem:[%s5238_s8] sm:$0xff] }
  0xc9   : > { %v823_v41 = vadd.f32 %v815_v32, %v750_v28  ;;  %v752_v22 = vadd.f32 %v744_v30, %v664_v29 }
  0xca   : > { %v4539_v52 = vpop.permute.xlu1 %803  ;;  %v4543_v53 = vpop.permute.xlu0 %798 }
  0xcb   : > { %v817_v48 = vmul.f32 %v4539_v52, %v763_v23  ;;  %v816_v58 = vmul.f32 %v4543_v53, %v764_v43  ;;  %v4548_v54 = vadd.f32 %v4438_v24, %v823_v41  ;;  %v867_v43 = vrot.slane %v4447_v31, 1 }
  0xcd   : > { %v825_v45 = vadd.f32 %v817_v48, %v752_v22  ;;  %3463 = vmatprep.mubr.msk.f32.mxu0 %vm898_vm2, %v4548_v54  ;;  %v824_v56 = vadd.f32 %v816_v58, %v751_v44  ;;  %v846_v16 = vrot.slane %v4548_v54, 7  ;;  %v868_v44 = vrot.slane %v4502_v15, 1 }
  0xce   : > { %v4558_v60 = vpop.permute.xlu0 %808  ;;  %v880_v22 = vsel %vm762_vm1, %v866_v39, %v867_v43  ;;  %v869_v58 = vrot.slane %v4507_v17, 1 }
  0xcf   : > { %v818_v62 = vmul.f32 %v4558_v60, %v770_v33  ;;  %v4562_v4 = vadd.f32 %v4438_v24, %v824_v56  ;;  %v4565_v46 = vadd.f32 %v4438_v24, %v825_v45  ;;  %v853_v30 = vsel %vm689_vm0, %v845_v19, %v846_v16 }
  0xd0   : > { %v862_v35 = vmul.f32 %v853_v30, %v4498_v13  ;;  %v879_v59 = vsel %vm762_vm1, %v867_v43, %v868_v44  ;;  %v882_v45 = vmul.f32 %v880_v22, %v4415_v10  ;;  %v870_v56 = vrot.slane %v4548_v54, 1 }
  0xd1   : > { %v826_v57 = vadd.f32 %v818_v62, %v753_v3  ;;  %3464 = vmatmul.mubr.msk.f32.gmra.mrb[4].mxu0 %vm898_vm2, %v4562_v4  ;;  %v847_v28 = vrot.slane %v4562_v4, 7  ;;  %v848_v32 = vrot.slane %v4565_v46, 7  ;;  %v878_v33 = vsel %vm762_vm1, %v868_v44, %v869_v58  ;;  %v1371_v44 = vld [vmem:[%s5238_s8 + $0x10] sm:$0xff] }
  0xd2   : > { %3466 = vmatprep.mubr.msk.f32.mxu0 %vm898_vm2, %v4565_v46  ;;  %v871_v3 = vrot.slane %v4562_v4, 1  ;;  %v883_v62 = vmul.f32 %v879_v59, %v4396_v63  ;;  %v872_v5 = vrot.slane %v4565_v46, 1 }
  0xd3   : > { %v4573_v61 = vadd.f32 %v4438_v24, %v826_v57  ;;  %v1160_v24 = vld [vmem:[%s5236_s6 + $0x58] sm:$0xff]  ;;  %v852_v29 = vsel %vm689_vm0, %v846_v16, %v847_v28  ;;  %v851_v41 = vsel %vm689_vm0, %v847_v28, %v848_v32  ;;  %v884_v57 = vmul.f32 %v878_v33, %v4488_v2  ;;  %v1370_v28 = vld [vmem:[%s5238_s8 + $0x8] sm:$0xff] }
  0xd4   : > { %v3791_v21 = vpack.c.bf16 %v1160_v24, %v1159_v8  ;;  %v864_v49 = vmul.f32 %v851_v41, %v4520_v27  ;;  %v875_v24 = vsel %vm762_vm1, %v871_v3, %v872_v5  ;;  %v3803_v30 = vpack.c.bf16 %v1370_v28, %v1369_v42 }
  0xd5   : > { %3467 = vmatmul.mubr.msk.f32.gmra.mrb[6].mxu0 %vm898_vm2, %v4573_v61  ;;  %v849_v40 = vrot.slane %v4573_v61, 7  ;;  %v873_v6 = vrot.slane %v4573_v61, 1  ;;  %v887_v14 = vmul.f32 %v875_v24, %v4543_v53 }
  0xd7   : > { %v857_v11 = vsel %vm689_vm0, %v849_v40, %v842_v50  ;;  %v850_v23 = vsel %vm689_vm0, %v848_v32, %v849_v40  ;;  %v877_v50 = vsel %vm762_vm1, %v869_v58, %v870_v56  ;;  %v876_v40 = vsel %vm762_vm1, %v870_v56, %v871_v3  ;;  %v1859_v32 = vld [vmem:[%s5240_s10 + $0x20] sm:$0xff] }
  0xd8   : > { %v858_v18 = vmul.f32 %v857_v11, %v4347_v37  ;;  %v865_v48 = vmul.f32 %v850_v23, %v4496_v12  ;;  %v885_v7 = vmul.f32 %v877_v50, %v4459_v36  ;;  %v886_v8 = vmul.f32 %v876_v40, %v4524_v55  ;;  %v1635_v50 = vld [vmem:[%s5238_s8 + $0x40] sm:$0xff] }
  0xd9   : > { %v874_v11 = vsel %vm762_vm1, %v872_v5, %v873_v6  ;;  %v881_v16 = vsel %vm762_vm1, %v873_v6, %v866_v39  ;;  %v1636_v5 = vld [vmem:[%s5238_s8 + $0x48] sm:$0xff] }
  0xda   : > { %3477 = vmatprep.mubr.msk.f32.mxu0 %vm898_vm2, %v858_v18  ;;  %v888_v18 = vmul.f32 %v874_v11, %v4539_v52  ;;  %v889_v19 = vmul.f32 %v881_v16, %v4558_v60 }
  0xdb   : > { %3478 = vmatmul.mubr.msk.f32.vlgmr.msra.gmra.mrb[0].mxu0 %vm898_vm2, %v859_v20  ;;  %v1375_v20 = vld [vmem:[%s5238_s8 + $0x30] sm:$0xff] }
  0xdc   : > { %3480 = vmatprep.mubr.msk.f32.mxu0 %vm898_vm2, %v860_v25  ;;  %3790 = vmatpush3.bf16.msra.mxu0 %v4473_v51  ;;  %v863_v51 = vmul.f32 %v852_v29, %v4486_v1  ;;  %v3171_v29 = vld [vmem:[%s5237_s7] ss:$0 sm:$0xff] }
  0xdd   : > { %3792 = vmatprep.subr.bf16.mxu0 %v3791_v21 }
  0xdf   : > { %3481 = vmatmul.mubr.msk.f32.gmra.mrb[2].mxu0 %vm898_vm2, %v861_v34  ;;  %v1860_v34 = vld [vmem:[%s5240_s10 + $0x28] sm:$0xff] }
  0xe0   : > { %3483 = vmatprep.mubr.msk.f32.mxu0 %vm898_vm2, %v862_v35  ;;  %3794 = vmatpush3.bf16.msra.mxu0 %v3791_v21  ;;  %v1376_v21 = vld [vmem:[%s5238_s8 + $0x38] sm:$0xff]  ;;  %v3819_v35 = vpack.c.bf16 %v1860_v34, %v1859_v32 }
  0xe1   : > { %v3799_v25 = vpack.c.bf16 %v1376_v21, %v1375_v20 }
  0xe2   : > { %3820 = vmatprep.subr.bf16.mxu0 %v3819_v35 }
  0xe3   : > { %3484 = vmatmul.mubr.msk.f32.gmra.mrb[4].mxu0 %vm898_vm2, %v863_v51  ;;  %3800 = vmatprep.subr.bf16.mxu1 %v3799_v25 }
  0xe4   : > { %3486 = vmatprep.mubr.msk.f32.mxu0 %vm898_vm2, %v864_v49  ;;  %3802 = vmatpush3.bf16.msra.mxu1 %v3799_v25  ;;  %v1372_v49 = vld [vmem:[%s5238_s8 + $0x18] sm:$0xff] }
  0xe5   : > { %3804 = vmatprep.subr.bf16.mxu1 %v3803_v30  ;;  %v3807_v33 = vpack.c.bf16 %v1372_v49, %v1371_v44 }
  0xe7   : > { %3487 = vmatmul.mubr.msk.f32.gmra.mrb[6].mxu0 %vm898_vm2, %v865_v48 }
  0xe8   : > { %3497 = vmatprep.mubr.msk.f32.mxu0 %vm898_vm2, %v882_v45 }
  0xeb   : > { %3498 = vmatmul.mubr.msk.f32.vlgmr.msra.gmra.mrb[0].mxu0 %vm898_vm2, %v883_v62 }
  0xec   : > { %3500 = vmatprep.mubr.msk.f32.mxu0 %vm898_vm2, %v884_v57  ;;  %3822 = vmatpush3.bf16.msra.mxu0 %v3819_v35 }
  0xef   : > { %3501 = vmatmul.mubr.msk.f32.gmra.mrb[2].mxu0 %vm898_vm2, %v885_v7 }
  0xf0   : > { %3503 = vmatprep.mubr.msk.f32.mxu0 %vm898_vm2, %v886_v8 }
  0xf3   : > { %3504 = vmatmul.mubr.msk.f32.gmra.mrb[4].mxu0 %vm898_vm2, %v887_v14 }
  0xf4   : > { %3506 = vmatprep.mubr.msk.f32.mxu0 %vm898_vm2, %v888_v18  ;;  %v3811_v18 = vpack.c.bf16 %v1636_v5, %v1635_v50  ;;  %v1638_v5 = vld [vmem:[%s5238_s8 + $0x58] sm:$0xff] }
  0xf7   : > { %3507 = vmatmul.mubr.msk.f32.gmra.mrb[6].mxu0 %vm898_vm2, %v889_v19 }
 0x1be   : > { %v3499_v39 = vpop.f32.mrb[0].mxu0 }
 0x1bf   : > { %v1306_v41 = vadd.f32 %v3499_v39, %v3171_v29  ;;  %v1251_v51 = vpop.f32.mrb[1].mxu0 }
 0x1c0   : > { %v1305_v43 = vadd.f32 %v3171_v29, %v1251_v51 }
 0x1c1   : > { %v1314_v23 = vmax.f32 %v1306_v41, 0.0 }
 0x1c2   : > { %v4690_v22 = vmax.f32 %v1305_v43, 0.0  ;;  %v3502_v48 = vpop.f32.mrb[2].mxu0 }
 0x1c3   : > { %v1322_v58 = vrot.slane %v1314_v23, 7  ;;  %v1346_v59 = vrot.slane %v1314_v23, 1  ;;  %v1308_v45 = vadd.f32 %v3502_v48, %v3171_v29  ;;  %v1261_v56 = vpop.f32.mrb[3].mxu0 }
 0x1c4   : > { %v1321_v3 = vrot.slane %v4690_v22, 7  ;;  %v1345_v62 = vrot.slane %v4690_v22, 1  ;;  %v1307_v57 = vadd.f32 %v3171_v29, %v1261_v56  ;;  %3517 = vmatprep.mubr.msk.f32.mxu1 %vm898_vm2, %v4690_v22 }
 0x1c5   : > { %v1316_v6 = vmax.f32 %v1308_v45, 0.0  ;;  %3518 = vmatmul.mubr.msk.f32.vlgmr.msra.gmra.mrb[0].mxu1 %vm898_vm2, %v1314_v23 }
 0x1c6   : > { %v1335_v40 = vsel %vm689_vm0, %v1321_v3, %v1322_v58  ;;  %v1315_v7 = vmax.f32 %v1307_v57, 0.0  ;;  %v3505_v8 = vpop.f32.mrb[4].mxu0  ;;  %3806 = vmatpush3.bf16.msra.mxu1 %v3803_v30  ;;  %v4707_v24 = vsel %vm762_vm1, %v1345_v62, %v1346_v59 }
 0x1c7   : > { %v1324_v11 = vrot.slane %v1316_v6, 7  ;;  %v1310_v14 = vadd.f32 %v3505_v8, %v3171_v29  ;;  %v1271_v16 = vpop.f32.mrb[5].mxu0  ;;  %3808 = vmatprep.subr.bf16.mxu1 %v3807_v33  ;;  %v1348_v25 = vrot.slane %v1316_v6, 1 }
 0x1c8   : > { %v1323_v19 = vrot.slane %v1315_v7, 7  ;;  %v1347_v20 = vrot.slane %v1315_v7, 1  ;;  %v1309_v21 = vadd.f32 %v3171_v29, %v1271_v16  ;;  %3520 = vmatprep.mubr.msk.f32.mxu1 %vm898_vm2, %v1315_v7 }
 0x1c9   : > { %v1318_v42 = vmax.f32 %v1310_v14, 0.0  ;;  %3521 = vmatmul.mubr.msk.f32.gmra.mrb[2].mxu1 %vm898_vm2, %v1316_v6 }
 0x1ca   : > { %v1358_v28 = vsel %vm762_vm1, %v1346_v59, %v1347_v20  ;;  %v1317_v30 = vmax.f32 %v1309_v21, 0.0  ;;  %v3508_v32 = vpop.f32.mrb[6].mxu0  ;;  %3810 = vmatpush3.bf16.msra.mxu1 %v3807_v33  ;;  %v1334_v34 = vsel %vm689_vm0, %v1322_v58, %v1323_v19  ;;  %v1333_v35 = vsel %vm689_vm0, %v1323_v19, %v1324_v11 }
 0x1cb   : > { %v1326_v39 = vrot.slane %v1318_v42, 7  ;;  %v1312_v41 = vadd.f32 %v3508_v32, %v3171_v29  ;;  %v1281_v51 = vpop.f32.mrb[7].mxu0  ;;  %3812 = vmatprep.subr.bf16.mxu1 %v3811_v18  ;;  %v1350_v43 = vrot.slane %v1318_v42, 1  ;;  %v1357_v48 = vsel %vm762_vm1, %v1347_v20, %v1348_v25 }
 0x1cc   : > { %v1325_v44 = vrot.slane %v1317_v30, 7  ;;  %v1349_v49 = vrot.slane %v1317_v30, 1  ;;  %v1311_v23 = vadd.f32 %v3171_v29, %v1281_v51  ;;  %3523 = vmatprep.mubr.msk.f32.mxu1 %vm898_vm2, %v1317_v30  ;;  %v1637_v29 = vld [vmem:[%s5238_s8 + $0x50] sm:$0xff]  ;;  %v1338_v21 = vmul.f32 %v1335_v40, %v4398_v0 }
 0x1cd   : > { %v1320_v22 = vmax.f32 %v1312_v41, 0.0  ;;  %3524 = vmatmul.mubr.msk.f32.gmra.mrb[4].mxu1 %vm898_vm2, %v1318_v42  ;;  %v1340_v42 = vmul.f32 %v1333_v35, %v4461_v38  ;;  %v1362_v35 = vmul.f32 %v1358_v28, %v4396_v63 }
 0x1ce   : > { %v1319_v58 = vmax.f32 %v1311_v23, 0.0  ;;  %v1332_v59 = vsel %vm689_vm0, %v1324_v11, %v1325_v44  ;;  %v1331_v45 = vsel %vm689_vm0, %v1325_v44, %v1326_v39  ;;  %v1356_v6 = vsel %vm762_vm1, %v1348_v25, %v1349_v49  ;;  %v1861_v44 = vld [vmem:[%s5240_s10 + $0x30] sm:$0xff] }
 0x1cf   : > { %v1328_v56 = vrot.slane %v1320_v22, 7  ;;  %v1352_v33 = vrot.slane %v1320_v22, 1  ;;  %v1355_v7 = vsel %vm762_vm1, %v1349_v49, %v1350_v43  ;;  %v3815_v25 = vpack.c.bf16 %v1638_v5, %v1637_v29  ;;  %v1862_v49 = vld [vmem:[%s5240_s10 + $0x38] sm:$0xff]  ;;  %v2345_v29 = vld [vmem:[%s5242_s12 + $0x60] sm:$0xff]  ;;  %v2346_v5 = vld [vmem:[%s5242_s12 + $0x68] sm:$0xff] }
 0x1d0   : > { %v1327_v57 = vrot.slane %v1319_v58, 7  ;;  %v1351_v50 = vrot.slane %v1319_v58, 1  ;;  %3526 = vmatprep.mubr.msk.f32.mxu1 %vm898_vm2, %v1319_v58  ;;  %v1341_v30 = vmul.f32 %v1332_v59, %v4498_v13  ;;  %v1342_v40 = vmul.f32 %v1331_v45, %v4486_v1  ;;  %v2341_v59 = vld [vmem:[%s5242_s12 + $0x40] sm:$0xff]  ;;  %v2342_v45 = vld [vmem:[%s5242_s12 + $0x48] sm:$0xff] }
 0x1d1   : > { %3527 = vmatmul.mubr.msk.f32.gmra.mrb[6].mxu1 %vm898_vm2, %v1320_v22  ;;  %v1336_v8 = vsel %vm689_vm0, %v1328_v56, %v1321_v3  ;;  %v1360_v11 = vsel %vm762_vm1, %v1352_v33, %v1345_v62  ;;  %v1339_v62 = vmul.f32 %v1334_v34, %v4413_v9  ;;  %v1361_v34 = vmul.f32 %v4707_v24, %v4415_v10  ;;  %v1855_v22 = vld [vmem:[%s5240_s10] sm:$0xff] }
 0x1d2   : > { %v1337_v14 = vmul.f32 %v1336_v8, %v4347_v37  ;;  %v1330_v16 = vsel %vm689_vm0, %v1326_v39, %v1327_v57  ;;  %v1329_v19 = vsel %vm689_vm0, %v1327_v57, %v1328_v56  ;;  %v1354_v20 = vsel %vm762_vm1, %v1350_v43, %v1351_v50  ;;  %v2343_v56 = vld [vmem:[%s5242_s12 + $0x50] sm:$0xff]  ;;  %v2344_v57 = vld [vmem:[%s5242_s12 + $0x58] sm:$0xff] }
 0x1d3   : > { %v1353_v3 = vsel %vm762_vm1, %v1351_v50, %v1352_v33  ;;  %v1343_v32 = vmul.f32 %v1330_v16, %v4520_v27  ;;  %v1363_v39 = vmul.f32 %v1357_v48, %v4488_v2  ;;  %v1364_v41 = vmul.f32 %v1356_v6, %v4459_v36  ;;  %v1856_v48 = vld [vmem:[%s5240_s10 + $0x8] sm:$0xff] }
 0x1d4   : > { %3537 = vmatprep.mubr.msk.f32.mxu1 %vm898_vm2, %v1337_v14  ;;  %v1365_v51 = vmul.f32 %v1355_v7, %v4524_v55  ;;  %v1366_v24 = vmul.f32 %v1354_v20, %v4543_v53  ;;  %v1367_v43 = vmul.f32 %v1353_v3, %v4539_v52  ;;  %v1368_v28 = vmul.f32 %v1360_v11, %v4558_v60  ;;  %v3196_v7 = vld [vmem:[%s5239_s9] ss:$0 sm:$0xff]  ;;  %v1858_v3 = vld [vmem:[%s5240_s10 + $0x18] sm:$0xff] }
 0x1d5   : > { %3538 = vmatmul.mubr.msk.f32.vlgmr.msra.gmra.mrb[0].mxu1 %vm898_vm2, %v1338_v21  ;;  %v3823_v23 = vpack.c.bf16 %v1862_v49, %v1861_v44  ;;  %v3827_v58 = vpack.c.bf16 %v1856_v48, %v1855_v22  ;;  %v3843_v33 = vpack.c.bf16 %v2342_v45, %v2341_v59  ;;  %v3847_v50 = vpack.c.bf16 %v2344_v57, %v2343_v56 }
 0x1d6   : > { %3540 = vmatprep.mubr.msk.f32.mxu1 %vm898_vm2, %v1339_v62  ;;  %3814 = vmatpush3.bf16.msra.mxu1 %v3811_v18  ;;  %v1344_v18 = vmul.f32 %v1329_v19, %v4496_v12  ;;  %v3851_v6 = vpack.c.bf16 %v2346_v5, %v2345_v29 }
 0x1d7   : > { %3816 = vmatprep.subr.bf16.mxu1 %v3815_v25  ;;  %3824 = vmatprep.subr.bf16.mxu0 %v3823_v23 }
 0x1d8   : > { %3826 = vmatpush3.bf16.msra.mxu0 %v3823_v23 }
 0x1d9   : > { %3541 = vmatmul.mubr.msk.f32.gmra.mrb[2].mxu1 %vm898_vm2, %v1340_v42  ;;  %3828 = vmatprep.subr.bf16.mxu0 %v3827_v58 }
 0x1da   : > { %3543 = vmatprep.mubr.msk.f32.mxu1 %vm898_vm2, %v1341_v30  ;;  %3818 = vmatpush3.bf16.msra.mxu1 %v3815_v25  ;;  %v1857_v25 = vld [vmem:[%s5240_s10 + $0x10] sm:$0xff] }
 0x1db   : > { %3844 = vmatprep.subr.bf16.mxu1 %v3843_v33 }
 0x1dd   : > { %3544 = vmatmul.mubr.msk.f32.gmra.mrb[4].mxu1 %vm898_vm2, %v1342_v40 }
 0x1de   : > { %3546 = vmatprep.mubr.msk.f32.mxu1 %vm898_vm2, %v1343_v32 }
 0x1e1   : > { %3547 = vmatmul.mubr.msk.f32.gmra.mrb[6].mxu1 %vm898_vm2, %v1344_v18  ;;  %v3831_v18 = vpack.c.bf16 %v1858_v3, %v1857_v25 }
 0x1e2   : > { %3557 = vmatprep.mubr.msk.f32.mxu1 %vm898_vm2, %v1361_v34 }
 0x1e5   : > { %3558 = vmatmul.mubr.msk.f32.vlgmr.msra.gmra.mrb[0].mxu1 %vm898_vm2, %v1362_v35  ;;  %v2121_v35 = vld [vmem:[%s5240_s10 + $0x40] sm:$0xff] }
 0x1e6   : > { %3560 = vmatprep.mubr.msk.f32.mxu1 %vm898_vm2, %v1363_v39  ;;  %3846 = vmatpush3.bf16.msra.mxu1 %v3843_v33  ;;  %v2122_v39 = vld [vmem:[%s5240_s10 + $0x48] sm:$0xff] }
 0x1e7   : > { %3848 = vmatprep.subr.bf16.mxu1 %v3847_v50 }
 0x1e9   : > { %3561 = vmatmul.mubr.msk.f32.gmra.mrb[2].mxu1 %vm898_vm2, %v1364_v41 }
 0x1ea   : > { %3563 = vmatprep.mubr.msk.f32.mxu1 %vm898_vm2, %v1365_v51  ;;  %3850 = vmatpush3.bf16.msra.mxu1 %v3847_v50 }
 0x1eb   : > { %3852 = vmatprep.subr.bf16.mxu1 %v3851_v6 }
 0x1ed   : > { %3564 = vmatmul.mubr.msk.f32.gmra.mrb[4].mxu1 %vm898_vm2, %v1366_v24 }
 0x1ee   : > { %3566 = vmatprep.mubr.msk.f32.mxu1 %vm898_vm2, %v1367_v43  ;;  %3854 = vmatpush3.bf16.msra.mxu1 %v3851_v6  ;;  %v2124_v6 = vld [vmem:[%s5240_s10 + $0x58] sm:$0xff] }
 0x1f1   : > { %3567 = vmatmul.mubr.msk.f32.gmra.mrb[6].mxu1 %vm898_vm2, %v1368_v28  ;;  %v3835_v28 = vpack.c.bf16 %v2122_v39, %v2121_v35 }
 0x2b8   : > { %v3559_v8 = vpop.f32.mrb[0].mxu1 }
 0x2b9   : > { %v1784_v11 = vadd.f32 %v3559_v8, %v3196_v7  ;;  %v1729_v14 = vpop.f32.mrb[1].mxu1 }
 0x2ba   : > { %v1783_v16 = vadd.f32 %v3196_v7, %v1729_v14 }
 0x2bb   : > { %v1792_v19 = vadd.f32 %v1784_v11, %v4447_v31 }
 0x2bc   : > { %v1791_v20 = vadd.f32 %v1783_v16, %v4441_v26  ;;  %v3562_v21 = vpop.f32.mrb[2].mxu1 }
 0x2bd   : > { %v1786_v62 = vadd.f32 %v3562_v21, %v3196_v7  ;;  %v1739_v42 = vpop.f32.mrb[3].mxu1  ;;  %v4825_v32 = vmax.f32 %v1792_v19, 0.0 }
 0x2be   : > { %v4823_v30 = vmax.f32 %v1791_v20, 0.0  ;;  %v1785_v40 = vadd.f32 %v3196_v7, %v1739_v42 }
 0x2bf   : > { %v1794_v31 = vadd.f32 %v1786_v62, %v4507_v17 }
 0x2c0   : > { %v1793_v26 = vadd.f32 %v1785_v40, %v4502_v15  ;;  %v3565_v34 = vpop.f32.mrb[4].mxu1  ;;  %3577 = vmatprep.mubr.msk.f32.mxu0 %vm898_vm2, %v4823_v30  ;;  %v1807_v45 = vrot.slane %v4823_v30, 7 }
 0x2c1   : > { %v1788_v41 = vadd.f32 %v3565_v34, %v3196_v7  ;;  %v1749_v51 = vpop.f32.mrb[5].mxu1  ;;  %3578 = vmatmul.mubr.msk.f32.vlgmr.msra.gmra.mrb[8].mxu0 %vm898_vm2, %v4825_v32  ;;  %v4841_v24 = vmax.f32 %v1794_v31, 0.0 }
 0x2c2   : > { %v4839_v17 = vmax.f32 %v1793_v26, 0.0  ;;  %v1787_v15 = vadd.f32 %v3196_v7, %v1749_v51  ;;  %3830 = vmatpush3.bf16.msra.mxu0 %v3827_v58  ;;  %v1831_v26 = vrot.slane %v4823_v30, 1 }
 0x2c3   : > { %v1796_v43 = vadd.f32 %v1788_v41, %v4562_v4  ;;  %3832 = vmatprep.subr.bf16.mxu0 %v3831_v18  ;;  %v1810_v5 = vrot.slane %v4841_v24, 7 }
 0x2c4   : > { %v1795_v44 = vadd.f32 %v1787_v15, %v4548_v54  ;;  %v3568_v49 = vpop.f32.mrb[6].mxu1  ;;  %3580 = vmatprep.mubr.msk.f32.mxu0 %vm898_vm2, %v4839_v17  ;;  %v1808_v54 = vrot.slane %v4825_v32, 7  ;;  %v1809_v33 = vrot.slane %v4839_v17, 7  ;;  %v1833_v39 = vrot.slane %v4839_v17, 1 }
 0x2c5   : > { %v1790_v23 = vadd.f32 %v3568_v49, %v3196_v7  ;;  %v1759_v22 = vpop.f32.mrb[7].mxu1  ;;  %3581 = vmatmul.mubr.msk.f32.gmra.mrb[10].mxu0 %vm898_vm2, %v4841_v24  ;;  %v4851_v59 = vmax.f32 %v1796_v43, 0.0  ;;  %v1834_v15 = vrot.slane %v4841_v24, 1 }
 0x2c6   : > { %v4849_v48 = vmax.f32 %v1795_v44, 0.0  ;;  %v1789_v58 = vadd.f32 %v3196_v7, %v1759_v22  ;;  %3834 = vmatpush3.bf16.msra.mxu0 %v3831_v18  ;;  %v1821_v29 = vsel %vm689_vm0, %v1807_v45, %v1808_v54  ;;  %v1820_v11 = vsel %vm689_vm0, %v1808_v54, %v1809_v33 }
 0x2c7   : > { %v1798_v4 = vadd.f32 %v1790_v23, %v4573_v61  ;;  %3836 = vmatprep.subr.bf16.mxu0 %v3835_v28  ;;  %v1824_v16 = vmul.f32 %v1821_v29, %v4398_v0  ;;  %v1812_v20 = vrot.slane %v4851_v59, 7  ;;  %v1825_v21 = vmul.f32 %v1820_v11, %v4413_v9 }
 0x2c8   : > { %v1797_v56 = vadd.f32 %v1789_v58, %v4565_v46  ;;  %3583 = vmatprep.mubr.msk.f32.mxu0 %vm898_vm2, %v4849_v48  ;;  %v2123_v46 = vld [vmem:[%s5240_s10 + $0x50] sm:$0xff]  ;;  %v1811_v7 = vrot.slane %v4849_v48, 7  ;;  %v1819_v25 = vsel %vm689_vm0, %v1809_v33, %v1810_v5  ;;  %v1832_v18 = vrot.slane %v4825_v32, 1 }
 0x2c9   : > { %v4860_v57 = vmax.f32 %v1798_v4, 0.0  ;;  %3584 = vmatmul.mubr.msk.f32.gmra.mrb[12].mxu0 %vm898_vm2, %v4851_v59  ;;  %v3839_v19 = vpack.c.bf16 %v2124_v6, %v2123_v46  ;;  %v1826_v42 = vmul.f32 %v1819_v25, %v4461_v38  ;;  %v1835_v49 = vrot.slane %v4849_v48, 1  ;;  %v2334_v25 = vld [vmem:[%s5242_s12 + $0x8] sm:$0xff] }
 0x2ca   : > { %v4864_v50 = vmax.f32 %v1797_v56, 0.0  ;;  %v1818_v62 = vsel %vm689_vm0, %v1810_v5, %v1811_v7  ;;  %v1817_v31 = vsel %vm689_vm0, %v1811_v7, %v1812_v20  ;;  %v1845_v43 = vsel %vm762_vm1, %v1831_v26, %v1832_v18 }
 0x2cb   : > { %v1814_v61 = vrot.slane %v4860_v57, 7  ;;  %v1827_v40 = vmul.f32 %v1818_v62, %v4498_v13  ;;  %v1828_v35 = vmul.f32 %v1817_v31, %v4486_v1  ;;  %v1844_v44 = vsel %vm762_vm1, %v1832_v18, %v1833_v39  ;;  %v3221_v62 = vld [vmem:[%s5241_s11] ss:$0 sm:$0xff] }
 0x2cc   : > { %3586 = vmatprep.mubr.msk.f32.mxu0 %vm898_vm2, %v4864_v50  ;;  %v1813_v3 = vrot.slane %v4864_v50, 7  ;;  %v1847_v23 = vmul.f32 %v1845_v43, %v4415_v10  ;;  %v1836_v22 = vrot.slane %v4851_v59, 1  ;;  %v1843_v58 = vsel %vm762_vm1, %v1833_v39, %v1834_v15 }
 0x2cd   : > { %3587 = vmatmul.mubr.msk.f32.gmra.mrb[14].mxu0 %vm898_vm2, %v4860_v57  ;;  %v1822_v8 = vsel %vm689_vm0, %v1814_v61, %v1807_v45  ;;  %v1848_v4 = vmul.f32 %v1844_v44, %v4396_v63  ;;  %v1837_v54 = vrot.slane %v4864_v50, 1  ;;  %v1849_v45 = vmul.f32 %v1843_v58, %v4488_v2  ;;  %v2337_v58 = vld [vmem:[%s5242_s12 + $0x20] sm:$0xff] }
 0x2ce   : > { %v1823_v14 = vmul.f32 %v1822_v8, %v4347_v37  ;;  %v1816_v34 = vsel %vm689_vm0, %v1812_v20, %v1813_v3  ;;  %v1815_v51 = vsel %vm689_vm0, %v1813_v3, %v1814_v61  ;;  %v1842_v56 = vsel %vm762_vm1, %v1834_v15, %v1835_v49 }
 0x2cf   : > { %v1829_v41 = vmul.f32 %v1816_v34, %v4520_v27  ;;  %v1838_v33 = vrot.slane %v4860_v57, 1  ;;  %v1841_v61 = vsel %vm762_vm1, %v1835_v49, %v1836_v22  ;;  %v1850_v29 = vmul.f32 %v1842_v56, %v4459_v36  ;;  %v2336_v34 = vld [vmem:[%s5242_s12 + $0x18] sm:$0xff] }
 0x2d0   : > { %3597 = vmatprep.mubr.msk.f32.mxu0 %vm898_vm2, %v1823_v14  ;;  %v1851_v5 = vmul.f32 %v1841_v61, %v4524_v55  ;;  %v1840_v46 = vsel %vm762_vm1, %v1836_v22, %v1837_v54 }
 0x2d1   : > { %3598 = vmatmul.mubr.msk.f32.vlgmr.msra.gmra.mrb[8].mxu0 %vm898_vm2, %v1824_v16  ;;  %v1839_v6 = vsel %vm762_vm1, %v1837_v54, %v1838_v33  ;;  %v1852_v7 = vmul.f32 %v1840_v46, %v4543_v53  ;;  %v1846_v11 = vsel %vm762_vm1, %v1838_v33, %v1831_v26  ;;  %v2347_v16 = vld [vmem:[%s5242_s12 + $0x70] sm:$0xff] }
 0x2d2   : > { %3600 = vmatprep.mubr.msk.f32.mxu0 %vm898_vm2, %v1825_v21  ;;  %3838 = vmatpush3.bf16.msra.mxu0 %v3835_v28  ;;  %v1830_v28 = vmul.f32 %v1815_v51, %v4496_v12  ;;  %v1853_v8 = vmul.f32 %v1839_v6, %v4539_v52  ;;  %v1854_v14 = vmul.f32 %v1846_v11, %v4558_v60  ;;  %v2333_v21 = vld [vmem:[%s5242_s12] sm:$0xff]  ;;  %v2335_v26 = vld [vmem:[%s5242_s12 + $0x10] sm:$0xff] }
 0x2d3   : > { %3840 = vmatprep.subr.bf16.mxu0 %v3839_v19  ;;  %v3859_v3 = vpack.c.bf16 %v2334_v25, %v2333_v21  ;;  %v3863_v44 = vpack.c.bf16 %v2336_v34, %v2335_v26 }
 0x2d5   : > { %3601 = vmatmul.mubr.msk.f32.gmra.mrb[10].mxu0 %vm898_vm2, %v1826_v42 }
 0x2d6   : > { %3603 = vmatprep.mubr.msk.f32.mxu0 %vm898_vm2, %v1827_v40  ;;  %3842 = vmatpush3.bf16.msra.mxu0 %v3839_v19  ;;  %v2348_v19 = vld [vmem:[%s5242_s12 + $0x78] sm:$0xff] }
 0x2d7   : > { %v3855_v20 = vpack.c.bf16 %v2348_v19, %v2347_v16  ;;  %v2340_v16 = vld [vmem:[%s5242_s12 + $0x38] sm:$0xff] }
 0x2d9   : > { %3604 = vmatmul.mubr.msk.f32.gmra.mrb[12].mxu0 %vm898_vm2, %v1828_v35  ;;  %3856 = vmatprep.subr.bf16.mxu1 %v3855_v20 }
 0x2da   : > { %3606 = vmatprep.mubr.msk.f32.mxu0 %vm898_vm2, %v1829_v41  ;;  %3858 = vmatpush3.bf16.msra.mxu1 %v3855_v20 }
 0x2db   : > { %3860 = vmatprep.subr.bf16.mxu1 %v3859_v3 }
 0x2dd   : > { %3607 = vmatmul.mubr.msk.f32.gmra.mrb[14].mxu0 %vm898_vm2, %v1830_v28 }
 0x2de   : > { %3617 = vmatprep.mubr.msk.f32.mxu0 %vm898_vm2, %v1847_v23 }
 0x2e1   : > { %3618 = vmatmul.mubr.msk.f32.vlgmr.msra.gmra.mrb[8].mxu0 %vm898_vm2, %v1848_v4  ;;  %v2338_v4 = vld [vmem:[%s5242_s12 + $0x28] sm:$0xff] }
 0x2e2   : > { %3620 = vmatprep.mubr.msk.f32.mxu0 %vm898_vm2, %v1849_v45  ;;  %v3867_v6 = vpack.c.bf16 %v2338_v4, %v2337_v58 }
 0x2e5   : > { %3621 = vmatmul.mubr.msk.f32.gmra.mrb[10].mxu0 %vm898_vm2, %v1850_v29 }
 0x2e6   : > { %3623 = vmatprep.mubr.msk.f32.mxu0 %vm898_vm2, %v1851_v5 }
 0x2e9   : > { %3624 = vmatmul.mubr.msk.f32.gmra.mrb[12].mxu0 %vm898_vm2, %v1852_v7 }
 0x2ea   : > { %3626 = vmatprep.mubr.msk.f32.mxu0 %vm898_vm2, %v1853_v8 }
 0x2ed   : > { %3627 = vmatmul.mubr.msk.f32.gmra.mrb[14].mxu0 %vm898_vm2, %v1854_v14  ;;  %v2339_v14 = vld [vmem:[%s5242_s12 + $0x30] sm:$0xff] }
 0x2ee   : > { %v3871_v34 = vpack.c.bf16 %v2340_v16, %v2339_v14 }
 0x3b4   : > { %v3619_v42 = vpop.f32.mrb[8].mxu0 }
 0x3b5   : > { %v2270_v40 = vadd.f32 %v3619_v42, %v3221_v62  ;;  %v2215_v31 = vpop.f32.mrb[9].mxu0 }
 0x3b6   : > { %v2269_v18 = vadd.f32 %v3221_v62, %v2215_v31 }
 0x3b7   : > { %v2278_v35 = vmax.f32 %v2270_v40, 0.0 }
 0x3b8   : > { %v4974_v39 = vmax.f32 %v2269_v18, 0.0  ;;  %v3622_v41 = vpop.f32.mrb[10].mxu0 }
 0x3b9   : > { %v2286_v51 = vrot.slane %v2278_v35, 7  ;;  %v2310_v15 = vrot.slane %v2278_v35, 1  ;;  %v2272_v43 = vadd.f32 %v3622_v41, %v3221_v62  ;;  %v2225_v28 = vpop.f32.mrb[11].mxu0 }
 0x3ba   : > { %v2285_v49 = vrot.slane %v4974_v39, 7  ;;  %v2309_v23 = vrot.slane %v4974_v39, 1  ;;  %v2271_v22 = vadd.f32 %v3221_v62, %v2225_v28  ;;  %3645 = vmatprep.mubr.msk.f32.mxu1 %vm2349_vm3, %v4974_v39 }
 0x3bb   : > { %v2280_v54 = vmax.f32 %v2272_v43, 0.0  ;;  %3646 = vmatmul.mubr.msk.f32.vlgmr.msra.gmra.mrb[8].mxu1 %vm2349_vm3, %v2278_v35 }
 0x3bc   : > { %v4991_v45 = vsel %vm689_vm0, %v2285_v49, %v2286_v51  ;;  %v2279_v56 = vmax.f32 %v2271_v22, 0.0  ;;  %v3625_v33 = vpop.f32.mrb[12].mxu0  ;;  %3862 = vmatpush3.bf16.msra.mxu1 %v3859_v3  ;;  %v4997_v61 = vsel %vm762_vm1, %v2309_v23, %v2310_v15 }
 0x3bd   : > { %v2288_v29 = vrot.slane %v2280_v54, 7  ;;  %v2274_v5 = vadd.f32 %v3625_v33, %v3221_v62  ;;  %v2235_v46 = vpop.f32.mrb[13].mxu0  ;;  %3864 = vmatprep.subr.bf16.mxu1 %v3863_v44  ;;  %v2312_v19 = vrot.slane %v2280_v54, 1 }
 0x3be   : > { %v2287_v7 = vrot.slane %v2279_v56, 7  ;;  %v2311_v8 = vrot.slane %v2279_v56, 1  ;;  %v2273_v11 = vadd.f32 %v3221_v62, %v2235_v46  ;;  %3648 = vmatprep.mubr.msk.f32.mxu1 %vm2349_vm3, %v2279_v56 }
 0x3bf   : > { %v2282_v20 = vmax.f32 %v2274_v5, 0.0  ;;  %3649 = vmatmul.mubr.msk.f32.gmra.mrb[10].mxu1 %vm2349_vm3, %v2280_v54 }
 0x3c0   : > { %v5009_v21 = vsel %vm762_vm1, %v2310_v15, %v2311_v8  ;;  %v2281_v25 = vmax.f32 %v2273_v11, 0.0  ;;  %v3628_v3 = vpop.f32.mrb[14].mxu0  ;;  %3866 = vmatpush3.bf16.msra.mxu1 %v3863_v44  ;;  %v2298_v42 = vsel %vm689_vm0, %v2286_v51, %v2287_v7  ;;  %v2297_v40 = vsel %vm689_vm0, %v2287_v7, %v2288_v29  ;;  %v2608_v15 = vld [vmem:[%s5242_s12 + $0x80] sm:$0xff]  ;;  %v2609_v51 = vld [vmem:[%s5242_s12 + $0x88] sm:$0xff]  ;;  %v2610_v7 = vld [vmem:[%s5242_s12 + $0x90] sm:$0xff] }
 0x3c1   : > { %v2290_v31 = vrot.slane %v2282_v20, 7  ;;  %v2276_v18 = vadd.f32 %v3628_v3, %v3221_v62  ;;  %v2245_v26 = vpop.f32.mrb[15].mxu0  ;;  %3868 = vmatprep.subr.bf16.mxu1 %v3867_v6  ;;  %v2314_v35 = vrot.slane %v2282_v20, 1  ;;  %v5025_v22 = vsel %vm762_vm1, %v2311_v8, %v2312_v19  ;;  %v2612_v3 = vld [vmem:[%s5242_s12 + $0xa0] sm:$0xff] }
 0x3c2   : > { %v2289_v41 = vrot.slane %v2281_v25, 7  ;;  %v2313_v43 = vrot.slane %v2281_v25, 1  ;;  %v2275_v28 = vadd.f32 %v3221_v62, %v2245_v26  ;;  %3651 = vmatprep.mubr.msk.f32.mxu1 %vm2349_vm3, %v2281_v25  ;;  %v3875_v33 = vpack.c.bf16 %v2609_v51, %v2608_v15  ;;  %v2769_v26 = vld [vmem:[%s5244_s14 + $0x8] sm:$0xff] }
 0x3c3   : > { %v2284_v44 = vmax.f32 %v2276_v18, 0.0  ;;  %3652 = vmatmul.mubr.msk.f32.gmra.mrb[12].mxu1 %vm2349_vm3, %v2282_v20  ;;  %v2304_v47 = vmul.f32 %v2297_v40, %v4461_v38 }
 0x3c4   : > { %v2283_v58 = vmax.f32 %v2275_v28, 0.0  ;;  %3870 = vmatpush3.bf16.msra.mxu1 %v3867_v6  ;;  %v2296_v62 = vsel %vm689_vm0, %v2288_v29, %v2289_v41  ;;  %v2295_v4 = vsel %vm689_vm0, %v2289_v41, %v2290_v31  ;;  %v2611_v6 = vld [vmem:[%s5242_s12 + $0x98] sm:$0xff]  ;;  %v2320_v29 = vsel %vm762_vm1, %v2312_v19, %v2313_v43 }
 0x3c5   : > { %v2292_v54 = vrot.slane %v2284_v44, 7  ;;  %v2316_v56 = vrot.slane %v2284_v44, 1  ;;  %3872 = vmatprep.subr.bf16.mxu1 %v3871_v34  ;;  %v2319_v8 = vsel %vm762_vm1, %v2313_v43, %v2314_v35  ;;  %v3879_v39 = vpack.c.bf16 %v2611_v6, %v2610_v7  ;;  %v2771_v41 = vld [vmem:[%s5244_s14 + $0x18] sm:$0xff] }
 0x3c6   : > { %v2291_v5 = vrot.slane %v2283_v58, 7  ;;  %v2315_v46 = vrot.slane %v2283_v58, 1  ;;  %3654 = vmatprep.mubr.msk.f32.mxu1 %vm2349_vm3, %v2283_v58  ;;  %v2306_v18 = vmul.f32 %v2295_v4, %v4486_v1  ;;  %v2329_v28 = vmul.f32 %v2319_v8, %v4524_v55 }
 0x3c7   : > { %3655 = vmatmul.mubr.msk.f32.gmra.mrb[14].mxu1 %vm2349_vm3, %v2284_v44  ;;  %v2300_v11 = vsel %vm689_vm0, %v2292_v54, %v2285_v49  ;;  %v2324_v14 = vsel %vm762_vm1, %v2316_v56, %v2309_v23  ;;  %v2302_v49 = vmul.f32 %v4991_v45, %v4398_v0  ;;  %v2305_v45 = vmul.f32 %v2296_v62, %v4498_v13  ;;  %v2768_v13 = vld [vmem:[%s5244_s14] sm:$0xff] }
 0x3c8   : > { %3874 = vmatpush3.bf16.msra.mxu1 %v3871_v34  ;;  %v2301_v16 = vmul.f32 %v2300_v11, %v4347_v37  ;;  %v2294_v19 = vsel %vm689_vm0, %v2290_v31, %v2291_v5  ;;  %v2293_v20 = vsel %vm689_vm0, %v2291_v5, %v2292_v54  ;;  %v2318_v25 = vsel %vm762_vm1, %v2314_v35, %v2315_v46  ;;  %v2613_v31 = vld [vmem:[%s5242_s12 + $0xa8] sm:$0xff]  ;;  %v2770_v35 = vld [vmem:[%s5244_s14 + $0x10] sm:$0xff] }
 0x3c9   : > { %3876 = vmatprep.subr.bf16.mxu1 %v3875_v33  ;;  %v2317_v23 = vsel %vm762_vm1, %v2315_v46, %v2316_v56  ;;  %v2303_v37 = vmul.f32 %v2298_v42, %v4413_v9  ;;  %v3883_v0 = vpack.c.bf16 %v2613_v31, %v2612_v3  ;;  %v2614_v9 = vld [vmem:[%s5242_s12 + $0xb0] sm:$0xff]  ;;  %v2615_v42 = vld [vmem:[%s5242_s12 + $0xb8] sm:$0xff]  ;;  %v2307_v40 = vmul.f32 %v2294_v19, %v4520_v27 }
 0x3ca   : > { %3673 = vmatprep.mubr.msk.f32.mxu1 %vm2349_vm3, %v2301_v16  ;;  %v3887_v38 = vpack.c.bf16 %v2615_v42, %v2614_v9  ;;  %v2308_v34 = vmul.f32 %v2293_v20, %v4496_v12  ;;  %v3891_v1 = vpack.c.bf16 %v2769_v26, %v2768_v13  ;;  %v2325_v27 = vmul.f32 %v4997_v61, %v4415_v10  ;;  %v2976_v3 = vld [vmem:[%s5246_s16 + $0x10] sm:$0xff]  ;;  %v2977_v31 = vld [vmem:[%s5246_s16 + $0x18] sm:$0xff]  ;;  %v3257_v26 = vld [vmem:[%s5247_s17] ss:$0 sm:$0xff] }
 0x3cb   : > { %3674 = vmatmul.mubr.msk.f32.vlgmr.msra.gmra.mrb[8].mxu1 %vm2349_vm3, %v2302_v49  ;;  %v2326_v12 = vmul.f32 %v5009_v21, %v4396_v63  ;;  %v3895_v43 = vpack.c.bf16 %v2771_v41, %v2770_v35  ;;  %v2327_v10 = vmul.f32 %v5025_v22, %v4488_v2  ;;  %v2328_v61 = vmul.f32 %v2320_v29, %v4459_v36  ;;  %v2974_v49 = vld [vmem:[%s5246_s16] sm:$0xff]  ;;  %v2980_v42 = vld [vmem:[%s5246_s16 + $0x30] sm:$0xff] }
 0x3cc   : > { %3676 = vmatprep.mubr.msk.f32.mxu1 %vm2349_vm3, %v2303_v37  ;;  %3878 = vmatpush3.bf16.msra.mxu1 %v3875_v33  ;;  %v2330_v63 = vmul.f32 %v2318_v25, %v4543_v53  ;;  %v2331_v21 = vmul.f32 %v2317_v23, %v4539_v52  ;;  %v2332_v2 = vmul.f32 %v2324_v14, %v4558_v60  ;;  %v4121_v36 = vmov 0.0|0.0   ;;  %v3246_v52 = vld [vmem:[%s5243_s13] ss:$0 sm:$0xff] }
 0x3cd   : > { %3880 = vmatprep.subr.bf16.mxu1 %v3879_v39  ;;  %3899 = vmatprep.subr.bf16.mxu0 %v4121_v36  ;;  %v4123_v55 = vmov 0.0   ;;  %v3247_v53 = vld [vmem:[%s5245_s15] ss:$0 sm:$0xff] }
 0x3ce   : > { %3749 = vmatprep.mubr.msk.f32.mxu0 %vm4122_vm4, %v4123_v55  ;;  %v2900_v23 = vld [vmem:[%s5274_s3] sm:$0xf]  ;;  %s3064_s3 = scalar_lea.sflag [#allocation3], %s567_s20 }
 0x3cf   : > { %3677 = vmatmul.mubr.msk.f32.gmra.mrb[10].mxu1 %vm2349_vm3, %v2304_v47  ;;  %v3915_v47 = vpack.c.bf16 %v2977_v31, %v2976_v3 }
 0x3d0   : > { %3679 = vmatprep.mubr.msk.f32.mxu1 %vm2349_vm3, %v2305_v45  ;;  %3882 = vmatpush3.bf16.msra.mxu1 %v3879_v39  ;;  %v2975_v39 = vld [vmem:[%s5246_s16 + $0x8] sm:$0xff] }
 0x3d1   : > { %3884 = vmatprep.subr.bf16.mxu1 %v3883_v0  ;;  %v3912_v37 = vpack.c.bf16 %v2975_v39, %v2974_v49  ;;  %v2979_v45 = vld [vmem:[%s5246_s16 + $0x28] sm:$0xff] }
 0x3d3   : > { %3680 = vmatmul.mubr.msk.f32.gmra.mrb[12].mxu1 %vm2349_vm3, %v2306_v18  ;;  %v2981_v18 = vld [vmem:[%s5246_s16 + $0x38] sm:$0xff] }
 0x3d4   : > { %3682 = vmatprep.mubr.msk.f32.mxu1 %vm2349_vm3, %v2307_v40  ;;  %3886 = vmatpush3.bf16.msra.mxu1 %v3883_v0  ;;  %v2978_v0 = vld [vmem:[%s5246_s16 + $0x20] sm:$0xff] }
 0x3d5   : > { %3888 = vmatprep.subr.bf16.mxu1 %v3887_v38  ;;  %v3918_v9 = vpack.c.bf16 %v2979_v45, %v2978_v0 }
 0x3d7   : > { %3683 = vmatmul.mubr.msk.f32.gmra.mrb[14].mxu1 %vm2349_vm3, %v2308_v34 }
 0x3d8   : > { %3890 = vmatpush3.bf16.msra.mxu1 %v3887_v38  ;;  %3701 = vmatprep.mubr.msk.f32.mxu1 %vm2349_vm3, %v2325_v27  ;;  %v3921_v38 = vpack.c.bf16 %v2981_v18, %v2980_v42 }
 0x3d9   : > { %3892 = vmatprep.subr.bf16.mxu1 %v3891_v1 }
 0x3db   : > { %3702 = vmatmul.mubr.msk.f32.vlgmr.msra.gmra.mrb[8].mxu1 %vm2349_vm3, %v2326_v12 }
 0x3dc   : > { %3704 = vmatprep.mubr.msk.f32.mxu1 %vm2349_vm3, %v2327_v10  ;;  %3894 = vmatpush3.bf16.msra.mxu1 %v3891_v1 }
 0x3dd   : > { %3896 = vmatprep.subr.bf16.mxu1 %v3895_v43 }
 0x3df   : > { %3705 = vmatmul.mubr.msk.f32.gmra.mrb[10].mxu1 %vm2349_vm3, %v2328_v61 }
 0x3e0   : > { %3707 = vmatprep.mubr.msk.f32.mxu1 %vm2349_vm3, %v2329_v28  ;;  %3898 = vmatpush3.bf16.msra.mxu1 %v3895_v43 }
 0x3e3   : > { %3708 = vmatmul.mubr.msk.f32.gmra.mrb[12].mxu1 %vm2349_vm3, %v2330_v63 }
 0x3e4   : > { %3710 = vmatprep.mubr.msk.f32.mxu1 %vm2349_vm3, %v2331_v21 }
 0x3e7   : > { %3711 = vmatmul.mubr.msk.f32.gmra.mrb[14].mxu1 %vm2349_vm3, %v2332_v2 }
 0x3e8   : > { %3721 = vmatprep.mubr.msk.f32.mxu1 %vm898_vm2, %v4823_v30 }
 0x3eb   : > { %3722 = vmatmul.mubr.msk.f32.vlgmr.msra.gmra.mrb[8].mxu1 %vm898_vm2, %v4825_v32  ;;  %v3929_v32 = vadd.f32 %v3247_v53, %v3246_v52 }
 0x3ec   : > { %3724 = vmatprep.mubr.msk.f32.mxu1 %vm898_vm2, %v4839_v17 }
 0x3ef   : > { %3725 = vmatmul.mubr.msk.f32.gmra.mrb[10].mxu1 %vm898_vm2, %v4841_v24 }
 0x3f0   : > { %3727 = vmatprep.mubr.msk.f32.mxu1 %vm898_vm2, %v4849_v48 }
 0x3f3   : > { %3728 = vmatmul.mubr.msk.f32.gmra.mrb[12].mxu1 %vm898_vm2, %v4851_v59 }
 0x3f4   : > { %3730 = vmatprep.mubr.msk.f32.mxu1 %vm898_vm2, %v4864_v50 }
 0x3f7   : > { %3731 = vmatmul.mubr.msk.f32.gmra.mrb[14].mxu1 %vm898_vm2, %v4860_v57 }
 0x4be   : > { %v3723_v60 = vpop.f32.mrb[8].mxu1 }
 0x4bf   : > { %v3923_v30 = vadd.f32 %v3723_v60, %v3246_v52  ;;  %v2845_v17 = vpop.f32.mrb[9].mxu1 }
 0x4c0   : > { %v3925_v24 = vadd.f32 %v3246_v52, %v2845_v17 }
 0x4c1   : > { %v3924_v48 = vadd.f32 %v3923_v30, %v3247_v53 }
 0x4c2   : > { %v3926_v59 = vadd.f32 %v3925_v24, %v3247_v53  ;;  %v3726_v57 = vpop.f32.mrb[10].mxu1 }
 0x4c3   : > { %v2893_v50 = vmax.f32 %v3924_v48, 0.0  ;;  %v3928_v15 = vadd.f32 %v3929_v32, %v3726_v57  ;;  %v2855_v51 = vpop.f32.mrb[11].mxu1 }
 0x4c4   : > { %v2892_v44 = vmax.f32 %v3926_v59, 0.0  ;;  %v3930_v22 = vadd.f32 %v3929_v32, %v2855_v51 }
 0x4c5   : > { %v2895_v58 = vmax.f32 %v3928_v15, 0.0 }
 0x4c6   : > { %v3900_v62 = vpack.c.bf16 %v2893_v50, %v2892_v44  ;;  %v2894_v4 = vmax.f32 %v3930_v22, 0.0  ;;  %v3729_v54 = vpop.f32.mrb[12].mxu1 }
 0x4c7   : > { %v3932_v56 = vadd.f32 %v3929_v32, %v3729_v54  ;;  %v2865_v33 = vpop.f32.mrb[13].mxu1 }
 0x4c8   : > { %v3903_v5 = vpack.c.bf16 %v2895_v58, %v2894_v4  ;;  %v3934_v46 = vadd.f32 %v3929_v32, %v2865_v33  ;;  %3901 = vmatpush3.bf16.msra.mxu0 %v3900_v62 }
 0x4c9   : > { %v2897_v7 = vmax.f32 %v3932_v56, 0.0  ;;  %3902 = vmatprep.subr.bf16.mxu0 %v4121_v36 }
 0x4ca   : > { %v2896_v6 = vmax.f32 %v3934_v46, 0.0  ;;  %v3732_v29 = vpop.f32.mrb[14].mxu1 }
 0x4cb   : > { %v3936_v8 = vadd.f32 %v3929_v32, %v3732_v29  ;;  %v2875_v11 = vpop.f32.mrb[15].mxu1 }
 0x4cc   : > { %v3906_v14 = vpack.c.bf16 %v2897_v7, %v2896_v6  ;;  %v3938_v16 = vadd.f32 %v3929_v32, %v2875_v11  ;;  %3904 = vmatpush3.bf16.msra.mxu0 %v3903_v5 }
 0x4cd   : > { %v2899_v19 = vmax.f32 %v3936_v8, 0.0  ;;  %3905 = vmatprep.subr.bf16.mxu0 %v4121_v36 }
 0x4ce   : > { %v2898_v20 = vmax.f32 %v3938_v16, 0.0 }
 0x4d0   : > { %v3909_v25 = vpack.c.bf16 %v2899_v19, %v2898_v20  ;;  %3907 = vmatpush3.bf16.msra.mxu0 %v3906_v14 }
 0x4d1   : > { %3908 = vmatprep.subr.bf16.mxu0 %v4121_v36 }
 0x4d4   : > { %3910 = vmatpush3.bf16.msra.mxu0 %v3909_v25 }
 0x4d5   : > { %3911 = vmatprep.subr.bf16.mxu0 %v4121_v36 }
 0x4d7   : > { %3750 = vmatmul.mubr.msk.f32.vlgmr.msra.gmra.mrb[16].mxu0 %vm2349_vm3, %v2900_v23 }
 0x4d8   : > { %3913 = vmatpush3.bf16.msra.mxu0 %v3912_v37  ;;  %3768 = vmatprep.mubr.msk.f32.mxu0 %vm4122_vm4, %v4123_v55 }
 0x4d9   : > { %3914 = vmatprep.subr.bf16.mxu0 %v4121_v36 }
 0x4dc   : > { %3916 = vmatpush3.bf16.msra.mxu0 %v3915_v47 }
 0x4dd   : > { %3917 = vmatprep.subr.bf16.mxu0 %v4121_v36 }
 0x4e0   : > { %3919 = vmatpush3.bf16.msra.mxu0 %v3918_v9 }
 0x4e1   : > { %3920 = vmatprep.subr.bf16.mxu0 %v4121_v36 }
 0x4e4   : > { %3922 = vmatpush3.bf16.msra.mxu0 %v3921_v38 }
 0x5aa   : > { %v2970_v40 = vpop.f32.mrb[16].mxu0 }
 0x5ab   : > { %v3751_v13 = vpop.f32.mrb[17].mxu0  ;;  %3769 = vmatmul.mubr.msk.f32.vlgmr.msra.gmra.mrb[18].mxu0 %vm2349_vm3, %v2970_v40 }
 0x67e   : > { %v3058_v34 = vpop.f32.mrb[18].mxu0 }
 0x67f   : > { %v3059_v1 = vadd.f32 %v3257_v26, %v3058_v34  ;;  %v3770_v27 = vpop.f32.mrb[19].mxu0 }
 0x681   : > { %3062 = vst [vmem:[%s569_s27] sm:$0xf] %v3059_v1 }
 0x682   : > { %4069 = shalt.err (!%p4066_p3)
}
 0x683   : > { %s4070_s20 = scalar_lea.hbm %s5188_s30, 64  ;;  %s4074_s29 = scalar_lea.hbm %s5275_s18, 128 }
 0x684   : > { %p4071_p4 = scmp.ne.s32.totalorder %s5188_s30, %s4070_s20  ;;  %p4075_p9 = scmp.lt.u32.totalorder %s5188_s30, %s5275_s18 }
 0x685   : > { %p4076_p10 = scmp.lt.u32.totalorder %s4074_s29, %s4070_s20  ;;  %p4078_p12 = scmp.lt.u32.totalorder %s4070_s20, %s5188_s30 }
 0x686   : > { %p4072_p7 = pnand %p4071_p4, %p4258_p5 }
 0x687   : > { %p4077_p11 = por %p4076_p10, %p4075_p9 }
 0x688   : > { %p4073_p8 = pneg %p4072_p7 }
 0x689   : > { %p4079_p13 = por %p4078_p12, %p4077_p11 }
 0x68b   : > { %p4080_p0 = pnand %p4079_p13, %p4073_p8 }
 0x68d   : > { %4083 = shalt.err (!%p4080_p0)
}
 0x68e   : > { %4011 = dma.vmem_to_hbm [thread:$0]  (%p4258_p5), %s5190_s19, 64, %s5188_s30, %s3064_s3  }
 0x68f PF: > { %s5276_s1 = sld [smem:[#allocation7_spill]]  ;;  %s5277_s21 = sld [smem:[#allocation5_spill]] }
 0x695   : > { %p4017_p1 = scmp.ge.s32.totalorder %s5276_s1, 2  ;;  %s3089_s25 = sand.u32 1, %s5277_s21  }
 0x696   : > { %s3090_s27 = scalar_lea.sflag [#allocation3], %s3089_s25 }
 0x697   : > { %p4014_p2 = pnand %p4017_p1, %p4262_p6 }
 0x699   : > { %4101 = dma.done.wait (!%p4014_p2), %s3090_s27, 64  }
 0x69a   : > { %4103 = vsyncadd (!%p4014_p2), %s3090_s27, 4294967232  ;;  %s5279_s30 = sld [smem:[#allocation8_spill]]  ;;  %s5280_s20 = sld [smem:[#allocation6_spill]] }
 0x69b   : > { %s5281_s29 = sld [smem:[#allocation9_spill]]  ;;  %s5282_s27 = smov %s4110_s28 }
 0x6a0   : > { %p28_p3 = scmp.ge.s32.totalorder %s5279_s30, 4   ;;  %s5283_s28 = smov %s5280_s20 }
 0x6a2   :  { %30 = sbr.rel (!%p28_p3) target bundleno = 9 (0x9), region = 127 }
 0x6a9   :  { %3095 = vsyncpa [#allocation3], 1 }
 0x6aa   :  { %3097 = vsyncpa [#allocation3 + $0x1], 1 }

</bundles_post_ra>
